<compile_context>
chip_gen: v7x
topology: tpu7x:2x2x1
jax: 0.10.0
libtpu: 0.0.40
codegen_flags: <defaults>
</compile_context>

<pallas_src>
import math
import functools

import jax
import jax.numpy as jnp
from jax import lax
from jax.experimental import pallas as pl
from jax.experimental.pallas import tpu as pltpu


# ----------------------------- kernel helpers --------------------------------

def _layernorm(x, gamma, beta, eps=1e-5):
    mean = jnp.mean(x, axis=-1, keepdims=True)
    var = jnp.mean((x - mean) ** 2, axis=-1, keepdims=True)  # biased, like torch LN
    return (x - mean) * lax.rsqrt(var + eps) * gamma + beta


def _gelu_exact(x):
    # torch nn.GELU default: exact erf form.
    return 0.5 * x * (1.0 + lax.erf(x * (1.0 / math.sqrt(2.0))))


# ----------------------------- kernel -----------------------------------------

def transformer_block_kernel(x_ref,
                             wq_ref, bq_ref, wk_ref, bk_ref, wv_ref, bv_ref,
                             wo_ref, bo_ref,
                             g1_ref, be1_ref, g2_ref, be2_ref,
                             wf1_ref, bf1_ref, wf2_ref, bf2_ref,
                             o_ref, *, seq, embed, heads):
    """One grid step == one batch element: x_ref is a (1, S, E) f32 slab."""
    head_dim = embed // heads
    mxu_dt = wq_ref.dtype                      # bf16

    x = x_ref[0]                               # (S, E) f32, residual path stays f32
    xb = x.astype(mxu_dt)

    # ---- QKV projections: (S,E)@(E,E) bf16 MXU matmuls, f32 accumulation.
    # Weights arrive pre-transposed (contraction on the lane axis) and the
    # 1/sqrt(head_dim) scale is folded into wq/bq on the host.
    q = jnp.dot(xb, wq_ref[...], preferred_element_type=jnp.float32) + bq_ref[0]
    k = jnp.dot(xb, wk_ref[...], preferred_element_type=jnp.float32) + bk_ref[0]
    v = jnp.dot(xb, wv_ref[...], preferred_element_type=jnp.float32) + bv_ref[0]

    qb = q.astype(mxu_dt)
    kb = k.astype(mxu_dt)
    vb = v.astype(mxu_dt)

    # ---- Attention core: static per-head loop, lane-axis slices only (no
    # XLU transposes of q/k/v/ctx).  Scores are (S, S) per head.
    # TODO(synk): flash-style KV tiling (online softmax) for large S.
    ctx_parts = []
    for h in range(heads):
        lo = h * head_dim
        qh = qb[:, lo:lo + head_dim]           # (S, Dh)
        kh = kb[:, lo:lo + head_dim]           # (S, Dh)
        vh = vb[:, lo:lo + head_dim]           # (S, Dh)

        # NT matmul: contraction dim (Dh) on the lane axis of both operands.
        s = lax.dot_general(qh, kh, (((1,), (1,)), ((), ())),
                            preferred_element_type=jnp.float32)   # (S, S) f32
        s = s - jnp.max(s, axis=-1, keepdims=True)
        p = jnp.exp(s)
        # approx=True routes the reciprocal to the otherwise-idle EUP slot.
        p = p * pl.reciprocal(jnp.sum(p, axis=-1, keepdims=True), approx=True)

        ctx_parts.append(jnp.dot(p.astype(mxu_dt), vh,
                                 preferred_element_type=jnp.float32))  # (S, Dh)

    ctx = jnp.concatenate(ctx_parts, axis=-1)  # (S, E) f32

    attn = jnp.dot(ctx.astype(mxu_dt), wo_ref[...],
                   preferred_element_type=jnp.float32) + bo_ref[0]

    # dropout(p=0.1) is identity in eval mode.
    h1 = _layernorm(x + attn, g1_ref[0], be1_ref[0])

    # ---- Feed-forward: (S,E)@(E,F) -> GELU -> (S,F)@(F,E), bf16 MXU / f32 acc.
    # TODO(synk): tile F over an "arbitrary" grid axis with an f32 accumulator
    #             at production F so the FFN weights need not be fully resident.
    f = jnp.dot(h1.astype(mxu_dt), wf1_ref[...],
                preferred_element_type=jnp.float32) + bf1_ref[0]
    f = _gelu_exact(f)
    f = jnp.dot(f.astype(mxu_dt), wf2_ref[...],
                preferred_element_type=jnp.float32) + bf2_ref[0]

    o_ref[0] = _layernorm(h1 + f, g2_ref[0], be2_ref[0]).astype(o_ref.dtype)


# ----------------------------- wrapper ---------------------------------------

def transformer_block(x_sbe, params, num_heads):
    """x_sbe: (S, B, E) float32, same axis convention as the PyTorch module."""
    S, B, E = x_sbe.shape
    F = params['ff_b1'].shape[0]
    scale = (E // num_heads) ** -0.5
    wdt = jnp.bfloat16  # MXU operand dtype (f32 accumulation kept in-kernel)

    # Host-side (one-time) weight prep: split q/k/v slabs, transpose every
    # weight so the in-kernel contraction lands on the lane axis, fold the
    # head scale into the q projection, and downcast matmul weights to bf16.
    # Biases / LN params stay f32 (all non-matmul math is f32).
    wi = params['in_proj_weight']                       # (3E, E)
    bi = params['in_proj_bias']                         # (3E,)
    wq_t = (wi[:E].T * scale).astype(wdt)               # (E, E)
    wk_t = wi[E:2 * E].T.astype(wdt)                    # (E, E)
    wv_t = wi[2 * E:].T.astype(wdt)                     # (E, E)
    bq = (bi[:E] * scale).reshape(1, E).astype(jnp.float32)
    bk = bi[E:2 * E].reshape(1, E).astype(jnp.float32)
    bv = bi[2 * E:].reshape(1, E).astype(jnp.float32)
    wo_t = params['out_proj_weight'].T.astype(wdt)      # (E, E)
    bo = params['out_proj_bias'].reshape(1, E).astype(jnp.float32)
    g1 = params['ln1_gamma'].reshape(1, E).astype(jnp.float32)
    be1 = params['ln1_beta'].reshape(1, E).astype(jnp.float32)
    g2 = params['ln2_gamma'].reshape(1, E).astype(jnp.float32)
    be2 = params['ln2_beta'].reshape(1, E).astype(jnp.float32)
    wf1_t = params['ff_w1'].T.astype(wdt)               # (E, F)
    bf1 = params['ff_b1'].reshape(1, F).astype(jnp.float32)
    wf2_t = params['ff_w2'].T.astype(wdt)               # (F, E)
    bf2 = params['ff_b2'].reshape(1, E).astype(jnp.float32)

    weights = [wq_t, bq, wk_t, bk, wv_t, bv, wo_t, bo,
               g1, be1, g2, be2, wf1_t, bf1, wf2_t, bf2]

    # (S, B, E) -> (B, S, E): per-batch slabs become contiguous blocks the
    # pipeline can prefetch; at production shapes this layout should come from
    # the caller (batch_first) so the transpose disappears.
    x_bse = jnp.transpose(x_sbe, (1, 0, 2))

    kernel = functools.partial(transformer_block_kernel,
                               seq=S, embed=E, heads=num_heads)

    x_spec = pl.BlockSpec((1, S, E), lambda b: (b, 0, 0))
    # Constant index_map -> weights are DMA'd once and stay resident in VMEM.
    w_specs = [pl.BlockSpec(w.shape, lambda b, nd=w.ndim: (0,) * nd) for w in weights]

    out = pl.pallas_call(
        kernel,
        out_shape=jax.ShapeDtypeStruct((B, S, E), x_sbe.dtype),
        grid_spec=pltpu.PrefetchScalarGridSpec(
            num_scalar_prefetch=0,
            grid=(B,),
            in_specs=[x_spec] + w_specs,
            out_specs=pl.BlockSpec((1, S, E), lambda b: (b, 0, 0)),
        ),
        compiler_params=pltpu.CompilerParams(
            # "parallel" shards the batch axis across both TCs on v7x; no-op on
            # v5e/v6e.  The batch axis is embarrassingly parallel here.
            dimension_semantics=("parallel",),
            vmem_limit_bytes=64 * 1024 * 1024,
        ),
    )(x_bse, *weights)

    return jnp.transpose(out, (1, 0, 2))


# ----------------------------- pure-JAX reference -----------------------------

def reference(x_sbe, params, num_heads):
    S, B, E = x_sbe.shape
    Dh = E // num_heads
    x = jnp.transpose(x_sbe, (1, 0, 2))  # (B, S, E)

    qkv = jnp.einsum('bse,fe->bsf', x, params['in_proj_weight']) + params['in_proj_bias']
    q, k, v = jnp.split(qkv, 3, axis=-1)
    q = q.reshape(B, S, num_heads, Dh) * (Dh ** -0.5)
    k = k.reshape(B, S, num_heads, Dh)
    v = v.reshape(B, S, num_heads, Dh)
    scores = jnp.einsum('bqhd,bkhd->bhqk', q, k)
    p = jax.nn.softmax(scores, axis=-1)
    ctx = jnp.einsum('bhqk,bkhd->bqhd', p, v).reshape(B, S, E)
    attn = jnp.einsum('bse,fe->bsf', ctx, params['out_proj_weight']) + params['out_proj_bias']

    def ln(y, g, b):
        m = jnp.mean(y, -1, keepdims=True)
        va = jnp.mean((y - m) ** 2, -1, keepdims=True)
        return (y - m) / jnp.sqrt(va + 1e-5) * g + b

    h = ln(x + attn, params['ln1_gamma'], params['ln1_beta'])
    f = jnp.einsum('bse,fe->bsf', h, params['ff_w1']) + params['ff_b1']
    f = 0.5 * f * (1.0 + lax.erf(f / math.sqrt(2.0)))
    f = jnp.einsum('bsf,ef->bse', f, params['ff_w2']) + params['ff_b2']
    out = ln(h + f, params['ln2_gamma'], params['ln2_beta'])
    return jnp.transpose(out, (1, 0, 2))


# ----------------------------- main -------------------------------------------

if __name__ == "__main__":
    SEQ, BATCH, EMBED, HEADS, FF = 8, 2, 32, 4, 64

    key = jax.random.PRNGKey(0)
    keys = jax.random.split(key, 8)

    def init(k, shape, scale=0.05):
        return (scale * jax.random.normal(k, shape)).astype(jnp.float32)

    params = {
        'in_proj_weight': init(keys[0], (3 * EMBED, EMBED)),
        'in_proj_bias':   init(keys[1], (3 * EMBED,)),
        'out_proj_weight': init(keys[2], (EMBED, EMBED)),
        'out_proj_bias':  jnp.zeros((EMBED,), jnp.float32),
        'ln1_gamma': jnp.ones((EMBED,), jnp.float32),
        'ln1_beta':  jnp.zeros((EMBED,), jnp.float32),
        'ln2_gamma': jnp.ones((EMBED,), jnp.float32),
        'ln2_beta':  jnp.zeros((EMBED,), jnp.float32),
        'ff_w1': init(keys[3], (FF, EMBED)),
        'ff_b1': init(keys[4], (FF,)),
        'ff_w2': init(keys[5], (EMBED, FF)),
        'ff_b2': init(keys[6], (EMBED,)),
    }

    x = jax.random.normal(keys[7], (SEQ, BATCH, EMBED), dtype=jnp.float32)

    out = transformer_block(x, params, HEADS)
    out = jax.block_until_ready(out)

    ref = reference(x, params, HEADS)
    assert out.shape == (SEQ, BATCH, EMBED)
    # bf16 MXU operands (f32 accumulation) -> loosened tolerance vs the f32 ref.
    assert jnp.allclose(out, ref, rtol=2e-2, atol=2e-2), "mismatch vs JAX reference"

    print("KERNEL_OK")
</pallas_src>

<mosaic_0001>
module attributes {stable_mosaic.version = 11 : i64} {
  func.func @transformer_block_kernel(%arg0: i32, %arg1: memref<1x8x32xf32, #tpu.memory_space<vmem>>, %arg2: memref<32x32xbf16, #tpu.memory_space<vmem>>, %arg3: memref<1x32xf32, #tpu.memory_space<vmem>>, %arg4: memref<32x32xbf16, #tpu.memory_space<vmem>>, %arg5: memref<1x32xf32, #tpu.memory_space<vmem>>, %arg6: memref<32x32xbf16, #tpu.memory_space<vmem>>, %arg7: memref<1x32xf32, #tpu.memory_space<vmem>>, %arg8: memref<32x32xbf16, #tpu.memory_space<vmem>>, %arg9: memref<1x32xf32, #tpu.memory_space<vmem>>, %arg10: memref<1x32xf32, #tpu.memory_space<vmem>>, %arg11: memref<1x32xf32, #tpu.memory_space<vmem>>, %arg12: memref<1x32xf32, #tpu.memory_space<vmem>>, %arg13: memref<1x32xf32, #tpu.memory_space<vmem>>, %arg14: memref<32x64xbf16, #tpu.memory_space<vmem>>, %arg15: memref<1x64xf32, #tpu.memory_space<vmem>>, %arg16: memref<64x32xbf16, #tpu.memory_space<vmem>>, %arg17: memref<1x32xf32, #tpu.memory_space<vmem>>, %arg18: memref<1x8x32xf32, #tpu.memory_space<vmem>>) attributes {dimension_semantics = [#tpu.dimension_semantics<parallel>], iteration_bounds = array<i64: 2>, scalar_prefetch = 0 : i64, scratch_operands = 0 : i64, tpu.core_type = #tpu.core_type<tc>, window_params = [{transform_indices = @transform_0, window_bounds = array<i64: 1, 8, 32>}, {pipeline_mode = #tpu.pipeline_mode<synchronous>, transform_indices = @transform_1, window_bounds = array<i64: 32, 32>}, {pipeline_mode = #tpu.pipeline_mode<synchronous>, transform_indices = @transform_2, window_bounds = array<i64: 1, 32>}, {pipeline_mode = #tpu.pipeline_mode<synchronous>, transform_indices = @transform_3, window_bounds = array<i64: 32, 32>}, {pipeline_mode = #tpu.pipeline_mode<synchronous>, transform_indices = @transform_4, window_bounds = array<i64: 1, 32>}, {pipeline_mode = #tpu.pipeline_mode<synchronous>, transform_indices = @transform_5, window_bounds = array<i64: 32, 32>}, {pipeline_mode = #tpu.pipeline_mode<synchronous>, transform_indices = @transform_6, window_bounds = array<i64: 1, 32>}, {pipeline_mode = #tpu.pipeline_mode<synchronous>, transform_indices = @transform_7, window_bounds = array<i64: 32, 32>}, {pipeline_mode = #tpu.pipeline_mode<synchronous>, transform_indices = @transform_8, window_bounds = array<i64: 1, 32>}, {pipeline_mode = #tpu.pipeline_mode<synchronous>, transform_indices = @transform_9, window_bounds = array<i64: 1, 32>}, {pipeline_mode = #tpu.pipeline_mode<synchronous>, transform_indices = @transform_10, window_bounds = array<i64: 1, 32>}, {pipeline_mode = #tpu.pipeline_mode<synchronous>, transform_indices = @transform_11, window_bounds = array<i64: 1, 32>}, {pipeline_mode = #tpu.pipeline_mode<synchronous>, transform_indices = @transform_12, window_bounds = array<i64: 1, 32>}, {pipeline_mode = #tpu.pipeline_mode<synchronous>, transform_indices = @transform_13, window_bounds = array<i64: 32, 64>}, {pipeline_mode = #tpu.pipeline_mode<synchronous>, transform_indices = @transform_14, window_bounds = array<i64: 1, 64>}, {pipeline_mode = #tpu.pipeline_mode<synchronous>, transform_indices = @transform_15, window_bounds = array<i64: 64, 32>}, {pipeline_mode = #tpu.pipeline_mode<synchronous>, transform_indices = @transform_16, window_bounds = array<i64: 1, 32>}, {transform_indices = @transform_17, window_bounds = array<i64: 1, 8, 32>}]} {
    %c0 = arith.constant 0 : index
    %c0_0 = arith.constant 0 : index
    %c0_1 = arith.constant 0 : index
    %0 = vector.load %arg1[%c0, %c0_0, %c0_1] : memref<1x8x32xf32, #tpu.memory_space<vmem>>, vector<1x8x32xf32>
    %1 = vector.shape_cast %0 : vector<1x8x32xf32> to vector<8x32xf32>
    %2 = arith.truncf %1 : vector<8x32xf32> to vector<8x32xbf16>
    %c0_2 = arith.constant 0 : index
    %c0_3 = arith.constant 0 : index
    %3 = vector.load %arg2[%c0_2, %c0_3] : memref<32x32xbf16, #tpu.memory_space<vmem>>, vector<32x32xbf16>
    %cst = arith.constant dense<0.000000e+00> : vector<8x32xf32>
    %4 = tpu.matmul %2, %3, %cst {dimension_numbers = #tpu.dot_dimension_numbers<[1], [0], [0], [1], [0, 0, 1, 1], [], []>} : vector<8x32xbf16>, vector<32x32xbf16>, vector<8x32xf32> -> vector<8x32xf32>
    %c0_4 = arith.constant 0 : index
    %c0_5 = arith.constant 0 : index
    %5 = vector.load %arg3[%c0_4, %c0_5] : memref<1x32xf32, #tpu.memory_space<vmem>>, vector<1x32xf32>
    %6 = vector.shape_cast %5 : vector<1x32xf32> to vector<32xf32>
    %7 = vector.shape_cast %6 : vector<32xf32> to vector<1x32xf32>
    %8 = vector.broadcast %7 : vector<1x32xf32> to vector<8x32xf32>
    %9 = arith.addf %4, %8 : vector<8x32xf32>
    %c0_6 = arith.constant 0 : index
    %c0_7 = arith.constant 0 : index
    %10 = vector.load %arg4[%c0_6, %c0_7] : memref<32x32xbf16, #tpu.memory_space<vmem>>, vector<32x32xbf16>
    %cst_8 = arith.constant dense<0.000000e+00> : vector<8x32xf32>
    %11 = tpu.matmul %2, %10, %cst_8 {dimension_numbers = #tpu.dot_dimension_numbers<[1], [0], [0], [1], [0, 0, 1, 1], [], []>} : vector<8x32xbf16>, vector<32x32xbf16>, vector<8x32xf32> -> vector<8x32xf32>
    %c0_9 = arith.constant 0 : index
    %c0_10 = arith.constant 0 : index
    %12 = vector.load %arg5[%c0_9, %c0_10] : memref<1x32xf32, #tpu.memory_space<vmem>>, vector<1x32xf32>
    %13 = vector.shape_cast %12 : vector<1x32xf32> to vector<32xf32>
    %14 = vector.shape_cast %13 : vector<32xf32> to vector<1x32xf32>
    %15 = vector.broadcast %14 : vector<1x32xf32> to vector<8x32xf32>
    %16 = arith.addf %11, %15 : vector<8x32xf32>
    %c0_11 = arith.constant 0 : index
    %c0_12 = arith.constant 0 : index
    %17 = vector.load %arg6[%c0_11, %c0_12] : memref<32x32xbf16, #tpu.memory_space<vmem>>, vector<32x32xbf16>
    %cst_13 = arith.constant dense<0.000000e+00> : vector<8x32xf32>
    %18 = tpu.matmul %2, %17, %cst_13 {dimension_numbers = #tpu.dot_dimension_numbers<[1], [0], [0], [1], [0, 0, 1, 1], [], []>} : vector<8x32xbf16>, vector<32x32xbf16>, vector<8x32xf32> -> vector<8x32xf32>
    %c0_14 = arith.constant 0 : index
    %c0_15 = arith.constant 0 : index
    %19 = vector.load %arg7[%c0_14, %c0_15] : memref<1x32xf32, #tpu.memory_space<vmem>>, vector<1x32xf32>
    %20 = vector.shape_cast %19 : vector<1x32xf32> to vector<32xf32>
    %21 = vector.shape_cast %20 : vector<32xf32> to vector<1x32xf32>
    %22 = vector.broadcast %21 : vector<1x32xf32> to vector<8x32xf32>
    %23 = arith.addf %18, %22 : vector<8x32xf32>
    %24 = arith.truncf %9 : vector<8x32xf32> to vector<8x32xbf16>
    %25 = arith.truncf %16 : vector<8x32xf32> to vector<8x32xbf16>
    %26 = arith.truncf %23 : vector<8x32xf32> to vector<8x32xbf16>
    %27 = vector.extract_strided_slice %24 {offsets = [0, 0], sizes = [8, 8], strides = [1, 1]} : vector<8x32xbf16> to vector<8x8xbf16>
    %28 = vector.extract_strided_slice %25 {offsets = [0, 0], sizes = [8, 8], strides = [1, 1]} : vector<8x32xbf16> to vector<8x8xbf16>
    %29 = vector.extract_strided_slice %26 {offsets = [0, 0], sizes = [8, 8], strides = [1, 1]} : vector<8x32xbf16> to vector<8x8xbf16>
    %cst_16 = arith.constant dense<0.000000e+00> : vector<8x8xf32>
    %30 = tpu.matmul %27, %28, %cst_16 {dimension_numbers = #tpu.dot_dimension_numbers<[1], [1], [0], [0], [0, 0, 1, 0], [], []>} : vector<8x8xbf16>, vector<8x8xbf16>, vector<8x8xf32> -> vector<8x8xf32>
    %cst_17 = arith.constant dense<0xFF800000> : vector<8xf32>
    %31 = vector.multi_reduction <maximumf>, %30, %cst_17 [1] : vector<8x8xf32> to vector<8xf32>
    %32 = vector.shape_cast %31 : vector<8xf32> to vector<8x1xf32>
    %33 = vector.broadcast %32 : vector<8x1xf32> to vector<8x8xf32>
    %34 = arith.subf %30, %33 : vector<8x8xf32>
    %35 = math.exp %34 : vector<8x8xf32>
    %cst_18 = arith.constant dense<0.000000e+00> : vector<8xf32>
    %36 = vector.multi_reduction <add>, %35, %cst_18 [1] : vector<8x8xf32> to vector<8xf32>
    %37 = vector.shape_cast %36 : vector<8xf32> to vector<8x1xf32>
    %38 = tpu.reciprocal %37 {approx = true} : vector<8x1xf32> -> vector<8x1xf32>
    %39 = vector.broadcast %38 : vector<8x1xf32> to vector<8x8xf32>
    %40 = arith.mulf %35, %39 : vector<8x8xf32>
    %41 = arith.truncf %40 : vector<8x8xf32> to vector<8x8xbf16>
    %cst_19 = arith.constant dense<0.000000e+00> : vector<8x8xf32>
    %42 = tpu.matmul %41, %29, %cst_19 {dimension_numbers = #tpu.dot_dimension_numbers<[1], [0], [0], [1], [0, 0, 1, 1], [], []>} : vector<8x8xbf16>, vector<8x8xbf16>, vector<8x8xf32> -> vector<8x8xf32>
    %43 = vector.extract_strided_slice %24 {offsets = [0, 8], sizes = [8, 8], strides = [1, 1]} : vector<8x32xbf16> to vector<8x8xbf16>
    %44 = vector.extract_strided_slice %25 {offsets = [0, 8], sizes = [8, 8], strides = [1, 1]} : vector<8x32xbf16> to vector<8x8xbf16>
    %45 = vector.extract_strided_slice %26 {offsets = [0, 8], sizes = [8, 8], strides = [1, 1]} : vector<8x32xbf16> to vector<8x8xbf16>
    %cst_20 = arith.constant dense<0.000000e+00> : vector<8x8xf32>
    %46 = tpu.matmul %43, %44, %cst_20 {dimension_numbers = #tpu.dot_dimension_numbers<[1], [1], [0], [0], [0, 0, 1, 0], [], []>} : vector<8x8xbf16>, vector<8x8xbf16>, vector<8x8xf32> -> vector<8x8xf32>
    %cst_21 = arith.constant dense<0xFF800000> : vector<8xf32>
    %47 = vector.multi_reduction <maximumf>, %46, %cst_21 [1] : vector<8x8xf32> to vector<8xf32>
    %48 = vector.shape_cast %47 : vector<8xf32> to vector<8x1xf32>
    %49 = vector.broadcast %48 : vector<8x1xf32> to vector<8x8xf32>
    %50 = arith.subf %46, %49 : vector<8x8xf32>
    %51 = math.exp %50 : vector<8x8xf32>
    %cst_22 = arith.constant dense<0.000000e+00> : vector<8xf32>
    %52 = vector.multi_reduction <add>, %51, %cst_22 [1] : vector<8x8xf32> to vector<8xf32>
    %53 = vector.shape_cast %52 : vector<8xf32> to vector<8x1xf32>
    %54 = tpu.reciprocal %53 {approx = true} : vector<8x1xf32> -> vector<8x1xf32>
    %55 = vector.broadcast %54 : vector<8x1xf32> to vector<8x8xf32>
    %56 = arith.mulf %51, %55 : vector<8x8xf32>
    %57 = arith.truncf %56 : vector<8x8xf32> to vector<8x8xbf16>
    %cst_23 = arith.constant dense<0.000000e+00> : vector<8x8xf32>
    %58 = tpu.matmul %57, %45, %cst_23 {dimension_numbers = #tpu.dot_dimension_numbers<[1], [0], [0], [1], [0, 0, 1, 1], [], []>} : vector<8x8xbf16>, vector<8x8xbf16>, vector<8x8xf32> -> vector<8x8xf32>
    %59 = vector.extract_strided_slice %24 {offsets = [0, 16], sizes = [8, 8], strides = [1, 1]} : vector<8x32xbf16> to vector<8x8xbf16>
    %60 = vector.extract_strided_slice %25 {offsets = [0, 16], sizes = [8, 8], strides = [1, 1]} : vector<8x32xbf16> to vector<8x8xbf16>
    %61 = vector.extract_strided_slice %26 {offsets = [0, 16], sizes = [8, 8], strides = [1, 1]} : vector<8x32xbf16> to vector<8x8xbf16>
    %cst_24 = arith.constant dense<0.000000e+00> : vector<8x8xf32>
    %62 = tpu.matmul %59, %60, %cst_24 {dimension_numbers = #tpu.dot_dimension_numbers<[1], [1], [0], [0], [0, 0, 1, 0], [], []>} : vector<8x8xbf16>, vector<8x8xbf16>, vector<8x8xf32> -> vector<8x8xf32>
    %cst_25 = arith.constant dense<0xFF800000> : vector<8xf32>
    %63 = vector.multi_reduction <maximumf>, %62, %cst_25 [1] : vector<8x8xf32> to vector<8xf32>
    %64 = vector.shape_cast %63 : vector<8xf32> to vector<8x1xf32>
    %65 = vector.broadcast %64 : vector<8x1xf32> to vector<8x8xf32>
    %66 = arith.subf %62, %65 : vector<8x8xf32>
    %67 = math.exp %66 : vector<8x8xf32>
    %cst_26 = arith.constant dense<0.000000e+00> : vector<8xf32>
    %68 = vector.multi_reduction <add>, %67, %cst_26 [1] : vector<8x8xf32> to vector<8xf32>
    %69 = vector.shape_cast %68 : vector<8xf32> to vector<8x1xf32>
    %70 = tpu.reciprocal %69 {approx = true} : vector<8x1xf32> -> vector<8x1xf32>
    %71 = vector.broadcast %70 : vector<8x1xf32> to vector<8x8xf32>
    %72 = arith.mulf %67, %71 : vector<8x8xf32>
    %73 = arith.truncf %72 : vector<8x8xf32> to vector<8x8xbf16>
    %cst_27 = arith.constant dense<0.000000e+00> : vector<8x8xf32>
    %74 = tpu.matmul %73, %61, %cst_27 {dimension_numbers = #tpu.dot_dimension_numbers<[1], [0], [0], [1], [0, 0, 1, 1], [], []>} : vector<8x8xbf16>, vector<8x8xbf16>, vector<8x8xf32> -> vector<8x8xf32>
    %75 = vector.extract_strided_slice %24 {offsets = [0, 24], sizes = [8, 8], strides = [1, 1]} : vector<8x32xbf16> to vector<8x8xbf16>
    %76 = vector.extract_strided_slice %25 {offsets = [0, 24], sizes = [8, 8], strides = [1, 1]} : vector<8x32xbf16> to vector<8x8xbf16>
    %77 = vector.extract_strided_slice %26 {offsets = [0, 24], sizes = [8, 8], strides = [1, 1]} : vector<8x32xbf16> to vector<8x8xbf16>
    %cst_28 = arith.constant dense<0.000000e+00> : vector<8x8xf32>
    %78 = tpu.matmul %75, %76, %cst_28 {dimension_numbers = #tpu.dot_dimension_numbers<[1], [1], [0], [0], [0, 0, 1, 0], [], []>} : vector<8x8xbf16>, vector<8x8xbf16>, vector<8x8xf32> -> vector<8x8xf32>
    %cst_29 = arith.constant dense<0xFF800000> : vector<8xf32>
    %79 = vector.multi_reduction <maximumf>, %78, %cst_29 [1] : vector<8x8xf32> to vector<8xf32>
    %80 = vector.shape_cast %79 : vector<8xf32> to vector<8x1xf32>
    %81 = vector.broadcast %80 : vector<8x1xf32> to vector<8x8xf32>
    %82 = arith.subf %78, %81 : vector<8x8xf32>
    %83 = math.exp %82 : vector<8x8xf32>
    %cst_30 = arith.constant dense<0.000000e+00> : vector<8xf32>
    %84 = vector.multi_reduction <add>, %83, %cst_30 [1] : vector<8x8xf32> to vector<8xf32>
    %85 = vector.shape_cast %84 : vector<8xf32> to vector<8x1xf32>
    %86 = tpu.reciprocal %85 {approx = true} : vector<8x1xf32> -> vector<8x1xf32>
    %87 = vector.broadcast %86 : vector<8x1xf32> to vector<8x8xf32>
    %88 = arith.mulf %83, %87 : vector<8x8xf32>
    %89 = arith.truncf %88 : vector<8x8xf32> to vector<8x8xbf16>
    %cst_31 = arith.constant dense<0.000000e+00> : vector<8x8xf32>
    %90 = tpu.matmul %89, %77, %cst_31 {dimension_numbers = #tpu.dot_dimension_numbers<[1], [0], [0], [1], [0, 0, 1, 1], [], []>} : vector<8x8xbf16>, vector<8x8xbf16>, vector<8x8xf32> -> vector<8x8xf32>
    %91 = tpu.concatenate %42, %58, %74, %90 in 1 : vector<8x8xf32>, vector<8x8xf32>, vector<8x8xf32>, vector<8x8xf32> -> vector<8x32xf32>
    %92 = arith.truncf %91 : vector<8x32xf32> to vector<8x32xbf16>
    %c0_32 = arith.constant 0 : index
    %c0_33 = arith.constant 0 : index
    %93 = vector.load %arg8[%c0_32, %c0_33] : memref<32x32xbf16, #tpu.memory_space<vmem>>, vector<32x32xbf16>
    %cst_34 = arith.constant dense<0.000000e+00> : vector<8x32xf32>
    %94 = tpu.matmul %92, %93, %cst_34 {dimension_numbers = #tpu.dot_dimension_numbers<[1], [0], [0], [1], [0, 0, 1, 1], [], []>} : vector<8x32xbf16>, vector<32x32xbf16>, vector<8x32xf32> -> vector<8x32xf32>
    %c0_35 = arith.constant 0 : index
    %c0_36 = arith.constant 0 : index
    %95 = vector.load %arg9[%c0_35, %c0_36] : memref<1x32xf32, #tpu.memory_space<vmem>>, vector<1x32xf32>
    %96 = vector.shape_cast %95 : vector<1x32xf32> to vector<32xf32>
    %97 = vector.shape_cast %96 : vector<32xf32> to vector<1x32xf32>
    %98 = vector.broadcast %97 : vector<1x32xf32> to vector<8x32xf32>
    %99 = arith.addf %94, %98 : vector<8x32xf32>
    %100 = arith.addf %1, %99 : vector<8x32xf32>
    %c0_37 = arith.constant 0 : index
    %c0_38 = arith.constant 0 : index
    %101 = vector.load %arg10[%c0_37, %c0_38] : memref<1x32xf32, #tpu.memory_space<vmem>>, vector<1x32xf32>
    %102 = vector.shape_cast %101 : vector<1x32xf32> to vector<32xf32>
    %c0_39 = arith.constant 0 : index
    %c0_40 = arith.constant 0 : index
    %103 = vector.load %arg11[%c0_39, %c0_40] : memref<1x32xf32, #tpu.memory_space<vmem>>, vector<1x32xf32>
    %104 = vector.shape_cast %103 : vector<1x32xf32> to vector<32xf32>
    %cst_41 = arith.constant dense<0.000000e+00> : vector<8xf32>
    %105 = vector.multi_reduction <add>, %100, %cst_41 [1] : vector<8x32xf32> to vector<8xf32>
    %106 = vector.shape_cast %105 : vector<8xf32> to vector<8x1xf32>
    %cst_42 = arith.constant 3.200000e+01 : f32
    %107 = vector.broadcast %cst_42 : f32 to vector<8x1xf32>
    %108 = arith.divf %106, %107 : vector<8x1xf32>
    %109 = vector.broadcast %108 : vector<8x1xf32> to vector<8x32xf32>
    %110 = arith.subf %100, %109 : vector<8x32xf32>
    %111 = arith.mulf %110, %110 : vector<8x32xf32>
    %cst_43 = arith.constant dense<0.000000e+00> : vector<8xf32>
    %112 = vector.multi_reduction <add>, %111, %cst_43 [1] : vector<8x32xf32> to vector<8xf32>
    %113 = vector.shape_cast %112 : vector<8xf32> to vector<8x1xf32>
    %cst_44 = arith.constant 3.200000e+01 : f32
    %114 = vector.broadcast %cst_44 : f32 to vector<8x1xf32>
    %115 = arith.divf %113, %114 : vector<8x1xf32>
    %116 = vector.broadcast %108 : vector<8x1xf32> to vector<8x32xf32>
    %117 = arith.subf %100, %116 : vector<8x32xf32>
    %cst_45 = arith.constant 9.99999974E-6 : f32
    %118 = vector.broadcast %cst_45 : f32 to vector<8x1xf32>
    %119 = arith.addf %115, %118 : vector<8x1xf32>
    %120 = math.rsqrt %119 : vector<8x1xf32>
    %121 = vector.broadcast %120 : vector<8x1xf32> to vector<8x32xf32>
    %122 = arith.mulf %117, %121 : vector<8x32xf32>
    %123 = vector.shape_cast %102 : vector<32xf32> to vector<1x32xf32>
    %124 = vector.broadcast %123 : vector<1x32xf32> to vector<8x32xf32>
    %125 = arith.mulf %122, %124 : vector<8x32xf32>
    %126 = vector.shape_cast %104 : vector<32xf32> to vector<1x32xf32>
    %127 = vector.broadcast %126 : vector<1x32xf32> to vector<8x32xf32>
    %128 = arith.addf %125, %127 : vector<8x32xf32>
    %129 = arith.truncf %128 : vector<8x32xf32> to vector<8x32xbf16>
    %c0_46 = arith.constant 0 : index
    %c0_47 = arith.constant 0 : index
    %130 = vector.load %arg14[%c0_46, %c0_47] : memref<32x64xbf16, #tpu.memory_space<vmem>>, vector<32x64xbf16>
    %cst_48 = arith.constant dense<0.000000e+00> : vector<8x64xf32>
    %131 = tpu.matmul %129, %130, %cst_48 {dimension_numbers = #tpu.dot_dimension_numbers<[1], [0], [0], [1], [0, 0, 1, 1], [], []>} : vector<8x32xbf16>, vector<32x64xbf16>, vector<8x64xf32> -> vector<8x64xf32>
    %c0_49 = arith.constant 0 : index
    %c0_50 = arith.constant 0 : index
    %132 = vector.load %arg15[%c0_49, %c0_50] : memref<1x64xf32, #tpu.memory_space<vmem>>, vector<1x64xf32>
    %133 = vector.shape_cast %132 : vector<1x64xf32> to vector<64xf32>
    %134 = vector.shape_cast %133 : vector<64xf32> to vector<1x64xf32>
    %135 = vector.broadcast %134 : vector<1x64xf32> to vector<8x64xf32>
    %136 = arith.addf %131, %135 : vector<8x64xf32>
    %cst_51 = arith.constant 5.000000e-01 : f32
    %137 = vector.broadcast %cst_51 : f32 to vector<8x64xf32>
    %138 = arith.mulf %137, %136 : vector<8x64xf32>
    %cst_52 = arith.constant 0.707106769 : f32
    %139 = vector.broadcast %cst_52 : f32 to vector<8x64xf32>
    %140 = arith.mulf %136, %139 : vector<8x64xf32>
    %141 = math.erf %140 : vector<8x64xf32>
    %cst_53 = arith.constant 1.000000e+00 : f32
    %142 = vector.broadcast %cst_53 : f32 to vector<8x64xf32>
    %143 = arith.addf %142, %141 : vector<8x64xf32>
    %144 = arith.mulf %138, %143 : vector<8x64xf32>
    %145 = arith.truncf %144 : vector<8x64xf32> to vector<8x64xbf16>
    %c0_54 = arith.constant 0 : index
    %c0_55 = arith.constant 0 : index
    %146 = vector.load %arg16[%c0_54, %c0_55] : memref<64x32xbf16, #tpu.memory_space<vmem>>, vector<64x32xbf16>
    %cst_56 = arith.constant dense<0.000000e+00> : vector<8x32xf32>
    %147 = tpu.matmul %145, %146, %cst_56 {dimension_numbers = #tpu.dot_dimension_numbers<[1], [0], [0], [1], [0, 0, 1, 1], [], []>} : vector<8x64xbf16>, vector<64x32xbf16>, vector<8x32xf32> -> vector<8x32xf32>
    %c0_57 = arith.constant 0 : index
    %c0_58 = arith.constant 0 : index
    %148 = vector.load %arg17[%c0_57, %c0_58] : memref<1x32xf32, #tpu.memory_space<vmem>>, vector<1x32xf32>
    %149 = vector.shape_cast %148 : vector<1x32xf32> to vector<32xf32>
    %150 = vector.shape_cast %149 : vector<32xf32> to vector<1x32xf32>
    %151 = vector.broadcast %150 : vector<1x32xf32> to vector<8x32xf32>
    %152 = arith.addf %147, %151 : vector<8x32xf32>
    %153 = arith.addf %128, %152 : vector<8x32xf32>
    %c0_59 = arith.constant 0 : index
    %c0_60 = arith.constant 0 : index
    %154 = vector.load %arg12[%c0_59, %c0_60] : memref<1x32xf32, #tpu.memory_space<vmem>>, vector<1x32xf32>
    %155 = vector.shape_cast %154 : vector<1x32xf32> to vector<32xf32>
    %c0_61 = arith.constant 0 : index
    %c0_62 = arith.constant 0 : index
    %156 = vector.load %arg13[%c0_61, %c0_62] : memref<1x32xf32, #tpu.memory_space<vmem>>, vector<1x32xf32>
    %157 = vector.shape_cast %156 : vector<1x32xf32> to vector<32xf32>
    %cst_63 = arith.constant dense<0.000000e+00> : vector<8xf32>
    %158 = vector.multi_reduction <add>, %153, %cst_63 [1] : vector<8x32xf32> to vector<8xf32>
    %159 = vector.shape_cast %158 : vector<8xf32> to vector<8x1xf32>
    %cst_64 = arith.constant 3.200000e+01 : f32
    %160 = vector.broadcast %cst_64 : f32 to vector<8x1xf32>
    %161 = arith.divf %159, %160 : vector<8x1xf32>
    %162 = vector.broadcast %161 : vector<8x1xf32> to vector<8x32xf32>
    %163 = arith.subf %153, %162 : vector<8x32xf32>
    %164 = arith.mulf %163, %163 : vector<8x32xf32>
    %cst_65 = arith.constant dense<0.000000e+00> : vector<8xf32>
    %165 = vector.multi_reduction <add>, %164, %cst_65 [1] : vector<8x32xf32> to vector<8xf32>
    %166 = vector.shape_cast %165 : vector<8xf32> to vector<8x1xf32>
    %cst_66 = arith.constant 3.200000e+01 : f32
    %167 = vector.broadcast %cst_66 : f32 to vector<8x1xf32>
    %168 = arith.divf %166, %167 : vector<8x1xf32>
    %169 = vector.broadcast %161 : vector<8x1xf32> to vector<8x32xf32>
    %170 = arith.subf %153, %169 : vector<8x32xf32>
    %cst_67 = arith.constant 9.99999974E-6 : f32
    %171 = vector.broadcast %cst_67 : f32 to vector<8x1xf32>
    %172 = arith.addf %168, %171 : vector<8x1xf32>
    %173 = math.rsqrt %172 : vector<8x1xf32>
    %174 = vector.broadcast %173 : vector<8x1xf32> to vector<8x32xf32>
    %175 = arith.mulf %170, %174 : vector<8x32xf32>
    %176 = vector.shape_cast %155 : vector<32xf32> to vector<1x32xf32>
    %177 = vector.broadcast %176 : vector<1x32xf32> to vector<8x32xf32>
    %178 = arith.mulf %175, %177 : vector<8x32xf32>
    %179 = vector.shape_cast %157 : vector<32xf32> to vector<1x32xf32>
    %180 = vector.broadcast %179 : vector<1x32xf32> to vector<8x32xf32>
    %181 = arith.addf %178, %180 : vector<8x32xf32>
    %c0_68 = arith.constant 0 : index
    %c0_69 = arith.constant 0 : index
    %c0_70 = arith.constant 0 : index
    %182 = vector.load %arg18[%c0_68, %c0_69, %c0_70] : memref<1x8x32xf32, #tpu.memory_space<vmem>>, vector<1x8x32xf32>
    %183 = vector.shape_cast %182 : vector<1x8x32xf32> to vector<8x32xf32>
    %184 = vector.shape_cast %181 : vector<8x32xf32> to vector<1x8x32xf32>
    tpu.vector_store %arg18[%c0_68, %c0_69, %c0_70], %184 {strides = array<i32>} : memref<1x8x32xf32, #tpu.memory_space<vmem>>, vector<1x8x32xf32>,
    return
  }
  func.func @transform_0(%arg0: i32) -> (i32, i32, i32) {
    %c0_i32 = arith.constant 0 : i32
    %c0_i32_0 = arith.constant 0 : i32
    %c0_i32_1 = arith.constant 0 : i32
    return %arg0, %c0_i32, %c0_i32_0 : i32, i32, i32
  }
  func.func @transform_1(%arg0: i32) -> (i32, i32) {
    %c0_i32 = arith.constant 0 : i32
    %c0_i32_0 = arith.constant 0 : i32
    %c0_i32_1 = arith.constant 0 : i32
    return %c0_i32, %c0_i32_0 : i32, i32
  }
  func.func @transform_2(%arg0: i32) -> (i32, i32) {
    %c0_i32 = arith.constant 0 : i32
    %c0_i32_0 = arith.constant 0 : i32
    %c0_i32_1 = arith.constant 0 : i32
    return %c0_i32, %c0_i32_0 : i32, i32
  }
  func.func @transform_3(%arg0: i32) -> (i32, i32) {
    %c0_i32 = arith.constant 0 : i32
    %c0_i32_0 = arith.constant 0 : i32
    %c0_i32_1 = arith.constant 0 : i32
    return %c0_i32, %c0_i32_0 : i32, i32
  }
  func.func @transform_4(%arg0: i32) -> (i32, i32) {
    %c0_i32 = arith.constant 0 : i32
    %c0_i32_0 = arith.constant 0 : i32
    %c0_i32_1 = arith.constant 0 : i32
    return %c0_i32, %c0_i32_0 : i32, i32
  }
  func.func @transform_5(%arg0: i32) -> (i32, i32) {
    %c0_i32 = arith.constant 0 : i32
    %c0_i32_0 = arith.constant 0 : i32
    %c0_i32_1 = arith.constant 0 : i32
    return %c0_i32, %c0_i32_0 : i32, i32
  }
  func.func @transform_6(%arg0: i32) -> (i32, i32) {
    %c0_i32 = arith.constant 0 : i32
    %c0_i32_0 = arith.constant 0 : i32
    %c0_i32_1 = arith.constant 0 : i32
    return %c0_i32, %c0_i32_0 : i32, i32
  }
  func.func @transform_7(%arg0: i32) -> (i32, i32) {
    %c0_i32 = arith.constant 0 : i32
    %c0_i32_0 = arith.constant 0 : i32
    %c0_i32_1 = arith.constant 0 : i32
    return %c0_i32, %c0_i32_0 : i32, i32
  }
  func.func @transform_8(%arg0: i32) -> (i32, i32) {
    %c0_i32 = arith.constant 0 : i32
    %c0_i32_0 = arith.constant 0 : i32
    %c0_i32_1 = arith.constant 0 : i32
    return %c0_i32, %c0_i32_0 : i32, i32
  }
  func.func @transform_9(%arg0: i32) -> (i32, i32) {
    %c0_i32 = arith.constant 0 : i32
    %c0_i32_0 = arith.constant 0 : i32
    %c0_i32_1 = arith.constant 0 : i32
    return %c0_i32, %c0_i32_0 : i32, i32
  }
  func.func @transform_10(%arg0: i32) -> (i32, i32) {
    %c0_i32 = arith.constant 0 : i32
    %c0_i32_0 = arith.constant 0 : i32
    %c0_i32_1 = arith.constant 0 : i32
    return %c0_i32, %c0_i32_0 : i32, i32
  }
  func.func @transform_11(%arg0: i32) -> (i32, i32) {
    %c0_i32 = arith.constant 0 : i32
    %c0_i32_0 = arith.constant 0 : i32
    %c0_i32_1 = arith.constant 0 : i32
    return %c0_i32, %c0_i32_0 : i32, i32
  }
  func.func @transform_12(%arg0: i32) -> (i32, i32) {
    %c0_i32 = arith.constant 0 : i32
    %c0_i32_0 = arith.constant 0 : i32
    %c0_i32_1 = arith.constant 0 : i32
    return %c0_i32, %c0_i32_0 : i32, i32
  }
  func.func @transform_13(%arg0: i32) -> (i32, i32) {
    %c0_i32 = arith.constant 0 : i32
    %c0_i32_0 = arith.constant 0 : i32
    %c0_i32_1 = arith.constant 0 : i32
    return %c0_i32, %c0_i32_0 : i32, i32
  }
  func.func @transform_14(%arg0: i32) -> (i32, i32) {
    %c0_i32 = arith.constant 0 : i32
    %c0_i32_0 = arith.constant 0 : i32
    %c0_i32_1 = arith.constant 0 : i32
    return %c0_i32, %c0_i32_0 : i32, i32
  }
  func.func @transform_15(%arg0: i32) -> (i32, i32) {
    %c0_i32 = arith.constant 0 : i32
    %c0_i32_0 = arith.constant 0 : i32
    %c0_i32_1 = arith.constant 0 : i32
    return %c0_i32, %c0_i32_0 : i32, i32
  }
  func.func @transform_16(%arg0: i32) -> (i32, i32) {
    %c0_i32 = arith.constant 0 : i32
    %c0_i32_0 = arith.constant 0 : i32
    %c0_i32_1 = arith.constant 0 : i32
    return %c0_i32, %c0_i32_0 : i32, i32
  }
  func.func @transform_17(%arg0: i32) -> (i32, i32, i32) {
    %c0_i32 = arith.constant 0 : i32
    %c0_i32_0 = arith.constant 0 : i32
    %c0_i32_1 = arith.constant 0 : i32
    return %arg0, %c0_i32, %c0_i32_0 : i32, i32, i32
  }
}

</mosaic_0001>

<bundles_post_ra>
// kernel: tpu_custom_call.1
= control target key start
LH: loop header
LB: loop body
LE: loop exit
PB: predicated region body
PF: predicated region fallthrough
CT: control target
= control target key end

     0   :  { %s3763_s0 = inlined_call_operand.hbm [shape: f32[2,8,32], index: 0, kind: input, shape index: {}]   ;;  %s3764_s1 = inlined_call_operand.hbm [shape: bf16[32,32], index: 1, kind: input, shape index: {}]   ;;  %s3765_s2 = inlined_call_operand.hbm [shape: f32[1,32], index: 2, kind: input, shape index: {}]   ;;  %s3766_s3 = inlined_call_operand.hbm [shape: bf16[32,32], index: 3, kind: input, shape index: {}]   ;;  %s3767_s4 = inlined_call_operand.hbm [shape: f32[1,32], index: 4, kind: input, shape index: {}]   ;;  %s3768_s5 = inlined_call_operand.hbm [shape: bf16[32,32], index: 5, kind: input, shape index: {}]   ;;  %s3769_s6 = inlined_call_operand.hbm [shape: f32[1,32], index: 6, kind: input, shape index: {}]   ;;  %s3770_s7 = inlined_call_operand.hbm [shape: bf16[32,32], index: 7, kind: input, shape index: {}]   ;;  %s3771_s8 = inlined_call_operand.hbm [shape: f32[1,32], index: 8, kind: input, shape index: {}]   ;;  %s3772_s9 = inlined_call_operand.hbm [shape: f32[1,32], index: 9, kind: input, shape index: {}]   ;;  %s3773_s10 = inlined_call_operand.hbm [shape: f32[1,32], index: 10, kind: input, shape index: {}]   ;;  %s3774_s11 = inlined_call_operand.hbm [shape: f32[1,32], index: 11, kind: input, shape index: {}]   ;;  %s3775_s12 = inlined_call_operand.hbm [shape: f32[1,32], index: 12, kind: input, shape index: {}]   ;;  %s3776_s13 = inlined_call_operand.hbm [shape: bf16[32,64], index: 13, kind: input, shape index: {}]   ;;  %s3777_s14 = inlined_call_operand.hbm [shape: f32[1,64], index: 14, kind: input, shape index: {}]   ;;  %s3778_s15 = inlined_call_operand.hbm [shape: bf16[64,32], index: 15, kind: input, shape index: {}]   ;;  %s3779_s16 = inlined_call_operand.hbm [shape: f32[1,32], index: 16, kind: input, shape index: {}]   ;;  %s3780_s17 = inlined_call_operand.hbm [shape: f32[2,8,32], index: 17, kind: output, shape index: {}]  }
   0x1   :  { %3796 = sst [smem:[#allocation46_spill]] %s3763_s0 }
   0x2   :  { %3797 = sst [smem:[#allocation47_spill]] %s3764_s1 }
   0x3   :  { %3798 = sst [smem:[#allocation48_spill]] %s3765_s2 }
   0x4   :  { %3799 = sst [smem:[#allocation49_spill]] %s3766_s3 }
   0x5   :  { %3800 = sst [smem:[#allocation50_spill]] %s3767_s4 }
   0x6   :  { %3801 = sst [smem:[#allocation51_spill]] %s3768_s5 }
   0x7   :  { %3802 = sst [smem:[#allocation52_spill]] %s3779_s16 }
   0x8   :  { %3803 = sst [smem:[#allocation53_spill]] %s3780_s17 }
   0x9   :  { %22 = vsyncpa [#allocation3], 0 }
   0xa   :  { %24 = vsyncpa [#allocation3 + $0x1], 0 }
   0xb   :  { %25 = vsyncpa [#allocation6], 0 }
   0xc   :  { %26 = vsyncpa [#allocation9], 0 }
   0xd   :  { %27 = vsyncpa [#allocation12], 0 }
   0xe   :  { %28 = vsyncpa [#allocation15], 0 }
   0xf   :  { %29 = vsyncpa [#allocation18], 0 }
  0x10   :  { %30 = vsyncpa [#allocation21], 0 }
  0x11   :  { %31 = vsyncpa [#allocation24], 0 }
  0x12   :  { %32 = vsyncpa [#allocation27], 0 }
  0x13   :  { %33 = vsyncpa [#allocation4], 0 }
  0x14   :  { %35 = vsyncpa [#allocation4 + $0x1], 0  ;;  %s3119_s24 = smov 0   ;;  %s3121_s25 = smov 0  }
  0x15   :  { %s3123_s26 = smov 0   ;;  %s3125_s27 = smov 0  }
  0x16 LB: > { %3804 = sst [smem:[#allocation40_spill]] %s2987_s24  ;;  %s3001_s28 = smov [#allocation5]   ;;  %s2999_s27 = sphi %s3125_s27, %s3861_s27   ;;  %s2995_s26 = sphi %s3123_s26, %s3860_s26   ;;  %s2991_s25 = sphi %s3121_s25, %s3859_s25   ;;  %s2987_s24 = sphi %s3119_s24, %s3858_s24  }
  0x17   : > { %3805 = sst [smem:[#allocation41_spill]] %s2991_s25  ;;  %s446_s29 = sshll.u32 %s3001_s28, 4  ;;  %s3145_s29 = int_to_ptr.vmem [resolvable:$true] %s446_s29 }
  0x18   : > { %3806 = sst [smem:[#allocation42_spill]] %s2995_s26  ;;  %s3140_s0 = sadd.s32 4294967295, %s2999_s27  }
  0x19   : > { %3807 = sst [smem:[#allocation43_spill]] %s2999_s27  ;;  %p1953_p0 = scmp.ge.s32.totalorder %s2999_s27, 1 }
  0x1a   : > { %3808 = sst [smem:[#allocation44_spill]] %s3140_s0  ;;  %p3793_p1 = scmp.eq.s32.totalorder %s3140_s0, 0 }
  0x1b   : > { %p434_p2 = scmp.lt.s32.totalorder %s2999_s27, 3  ;;  %s3002_s18 = smov [#allocation8]  }
  0x1c   : > { %s470_s19 = sshll.u32 %s3002_s18, 4  ;;  %s3003_s20 = smov [#allocation11]   ;;  %s3160_s19 = int_to_ptr.vmem [resolvable:$true] %s470_s19 }
  0x1d   : > { %p3147_p3 = pnand %p1953_p0, %p434_p2  ;;  %s494_s21 = sshll.u32 %s3003_s20, 4  ;;  %s3162_s21 = int_to_ptr.vmem [resolvable:$true] %s494_s21 }
  0x1e   : > { %s3812_s28 = sld [smem:[#allocation47_spill]] }
  0x1f   : > { %s3809_s30 = scalar_select %p3147_p3, 1, 0 }
  0x20   : > { %p2238_p5 = pneg %p3147_p3 }
  0x21   : > { %3810 = sst [smem:[#allocation45_spill]] %s3809_s30 }
  0x22   : > { %p3156_p6 = pnand %p2238_p5, %p3793_p1 }
  0x24   : > { %s2423_s17 = scalar_lea.hbm %s3812_s28, 256  ;;  %p3172_p8 = pneg %p3156_p6 }
  0x25   : > { %p2424_p7 = scmp.ne.s32.totalorder %s3812_s28, %s2423_s17  ;;  %p2430_p11 = scmp.lt.u32.totalorder %s2423_s17, %s3812_s28 }
  0x27   : > { %p2426_p9 = pnand %p3172_p8, %p2424_p7 }
  0x29   : > { %p2427_p10 = pneg %p2426_p9 }
  0x2b   : > { %p2432_p12 = pnand %p2430_p11, %p2427_p10 }
  0x2d   : > { %2435 = shalt.err (!%p2432_p12)
}
  0x2e   : > { %s2436_s24 = scalar_lea.vmem %s3145_s29, 256  ;;  %p2444_p5 = scmp.lt.s32.totalorder %s3145_s29, %s3145_s29 }
  0x2f   : > { %p2437_p13 = scmp.ne.s32.totalorder %s3145_s29, %s2436_s24  ;;  %p2445_p4 = scmp.lt.s32.totalorder %s2436_s24, %s2436_s24 }
  0x31   : > { %p2439_p0 = pnand %p2437_p13, %p3172_p8  ;;  %p2446_p7 = por %p2445_p4, %p2444_p5 }
  0x33   : > { %p2440_p2 = pneg %p2439_p0 }
  0x35   : > { %p2447_p9 = pnand %p2446_p7, %p2440_p2 }
  0x37   : > { %2450 = shalt.err (!%p2447_p9)
}
  0x38   : > { %s3004_s30 = smov 64   ;;  %s3005_s17 = smov 4  }
  0x39   : > { %2241 = dma.hbm_to_vmem [thread:$0]  (!%p3156_p6), %s3812_s28, 256, %s3145_s29, [#allocation6], %s3004_s30, %s3004_s30, %s3005_s17  }
  0x3a   : > { %s3814_s3 = sld [smem:[#allocation49_spill]] }
  0x40   : > { %s2451_s24 = scalar_lea.hbm %s3814_s3, 256 }
  0x41   : > { %p2452_p4 = scmp.ne.s32.totalorder %s3814_s3, %s2451_s24  ;;  %p2458_p12 = scmp.lt.u32.totalorder %s2451_s24, %s3814_s3 }
  0x43   : > { %p2454_p10 = pnand %p2452_p4, %p3172_p8 }
  0x45   : > { %p2455_p11 = pneg %p2454_p10 }
  0x47   : > { %p2460_p13 = pnand %p2458_p12, %p2455_p11 }
  0x49   : > { %2463 = shalt.err (!%p2460_p13)
}
  0x4a   : > { %s2464_s29 = scalar_lea.vmem %s3160_s19, 256  ;;  %p2472_p7 = scmp.lt.s32.totalorder %s3160_s19, %s3160_s19 }
  0x4b   : > { %p2465_p0 = scmp.ne.s32.totalorder %s3160_s19, %s2464_s29  ;;  %p2473_p9 = scmp.lt.s32.totalorder %s2464_s29, %s2464_s29 }
  0x4d   : > { %p2467_p2 = pnand %p2465_p0, %p3172_p8  ;;  %p2474_p4 = por %p2473_p9, %p2472_p7 }
  0x4f   : > { %p2468_p5 = pneg %p2467_p2 }
  0x51   : > { %p2475_p10 = pnand %p2474_p4, %p2468_p5 }
  0x53   : > { %2478 = shalt.err (!%p2475_p10)
}
  0x54   : > { %2247 = dma.hbm_to_vmem [thread:$0]  (!%p3156_p6), %s3814_s3, 256, %s3160_s19, [#allocation9], %s3004_s30, %s3004_s30, %s3005_s17  }
  0x55   : > { %s3815_s5 = sld [smem:[#allocation51_spill]] }
  0x5b   : > { %s2479_s0 = scalar_lea.hbm %s3815_s5, 256 }
  0x5c   : > { %p2480_p11 = scmp.ne.s32.totalorder %s3815_s5, %s2479_s0  ;;  %p2486_p0 = scmp.lt.u32.totalorder %s2479_s0, %s3815_s5 }
  0x5e   : > { %p2482_p12 = pnand %p2480_p11, %p3172_p8 }
  0x60   : > { %p2483_p13 = pneg %p2482_p12 }
  0x62   : > { %p2488_p2 = pnand %p2486_p0, %p2483_p13 }
  0x64   : > { %2491 = shalt.err (!%p2488_p2)
}
  0x65   : > { %s2492_s19 = scalar_lea.vmem %s3162_s21, 256  ;;  %p2500_p4 = scmp.lt.s32.totalorder %s3162_s21, %s3162_s21 }
  0x66   : > { %p2493_p5 = scmp.ne.s32.totalorder %s3162_s21, %s2492_s19  ;;  %p2501_p10 = scmp.lt.s32.totalorder %s2492_s19, %s2492_s19 }
  0x68   : > { %p2495_p7 = pnand %p2493_p5, %p3172_p8  ;;  %p2502_p11 = por %p2501_p10, %p2500_p4 }
  0x6a   : > { %p2496_p9 = pneg %p2495_p7 }
  0x6c   : > { %p2503_p12 = pnand %p2502_p11, %p2496_p9 }
  0x6e   : > { %2506 = shalt.err (!%p2503_p12)
}
  0x6f   : > { %2253 = dma.hbm_to_vmem [thread:$0]  (!%p3156_p6), %s3815_s5, 256, %s3162_s21, [#allocation12], %s3004_s30, %s3004_s30, %s3005_s17  }
  0x70   : > { %s3006_s25 = smov [#allocation14]   ;;  %s3007_s27 = smov [#allocation17]  }
  0x71   : > { %s518_s26 = sshll.u32 %s3006_s25, 4  ;;  %s543_s0 = sshll.u32 %s3007_s27, 4  ;;  %s519_s26 = int_to_ptr.vmem [resolvable:$true] %s518_s26  ;;  %s544_s0 = int_to_ptr.vmem [resolvable:$true] %s543_s0 }
  0x72   : > { %s2507_s20 = scalar_lea.hbm %s3770_s7, 256 }
  0x73   : > { %p2508_p13 = scmp.ne.s32.totalorder %s3770_s7, %s2507_s20  ;;  %p2514_p5 = scmp.lt.u32.totalorder %s2507_s20, %s3770_s7 }
  0x75   : > { %p2510_p0 = pnand %p2508_p13, %p3172_p8 }
  0x77   : > { %p2511_p2 = pneg %p2510_p0 }
  0x79   : > { %p2516_p7 = pnand %p2514_p5, %p2511_p2 }
  0x7b   : > { %2519 = shalt.err (!%p2516_p7)
}
  0x7c   : > { %s2520_s21 = scalar_lea.vmem %s519_s26, 256  ;;  %p2528_p11 = scmp.lt.s32.totalorder %s519_s26, %s519_s26 }
  0x7d   : > { %p2521_p9 = scmp.ne.s32.totalorder %s519_s26, %s2520_s21  ;;  %p2529_p12 = scmp.lt.s32.totalorder %s2520_s21, %s2520_s21 }
  0x7f   : > { %p2523_p4 = pnand %p2521_p9, %p3172_p8  ;;  %p2530_p1 = por %p2529_p12, %p2528_p11 }
  0x81   : > { %p2524_p10 = pneg %p2523_p4 }
  0x83   : > { %p2531_p3 = pnand %p2530_p1, %p2524_p10 }
  0x85   : > { %2534 = shalt.err (!%p2531_p3)
}
  0x86   : > { %2259 = dma.hbm_to_vmem [thread:$0]  (!%p3156_p6), %s3770_s7, 256, %s519_s26, [#allocation15], %s3004_s30, %s3004_s30, %s3005_s17  }
  0x87   : > { %s2535_s22 = scalar_lea.hbm %s3772_s9, 16 }
  0x88   : > { %p2536_p1 = scmp.ne.s32.totalorder %s3772_s9, %s2535_s22  ;;  %p2542_p0 = scmp.lt.u32.totalorder %s2535_s22, %s3772_s9 }
  0x8a   : > { %p2538_p3 = pnand %p2536_p1, %p3172_p8 }
  0x8c   : > { %p2539_p13 = pneg %p2538_p3 }
  0x8e   : > { %p2544_p2 = pnand %p2542_p0, %p2539_p13 }
  0x90   : > { %2547 = shalt.err (!%p2544_p2)
}
  0x91   : > { %s2548_s29 = scalar_lea.vmem %s544_s0, 16  ;;  %s2555_s26 = scalar_lea.vmem %s544_s0, 32 }
  0x92   : > { %p2549_p5 = scmp.ne.s32.totalorder %s544_s0, %s2548_s29  ;;  %p2556_p4 = scmp.lt.s32.totalorder %s544_s0, %s544_s0 }
  0x93   : > { %p2557_p10 = scmp.lt.s32.totalorder %s2555_s26, %s2548_s29 }
  0x94   : > { %p2551_p7 = pnand %p2549_p5, %p3172_p8 }
  0x95   : > { %p2558_p11 = por %p2557_p10, %p2556_p4 }
  0x96   : > { %p2552_p9 = pneg %p2551_p7 }
  0x98   : > { %p2559_p12 = pnand %p2558_p11, %p2552_p9 }
  0x9a   : > { %2562 = shalt.err (!%p2559_p12)
}
  0x9b   : > { %2265 = dma.hbm_to_vmem [thread:$0]  (!%p3156_p6), %s3772_s9, 16, %s544_s0, [#allocation18]  }
  0x9c   : > { %s3008_s16 = smov [#allocation20]   ;;  %s3009_s27 = smov [#allocation23]  }
  0x9d   : > { %s565_s25 = sshll.u32 %s3008_s16, 4  ;;  %s586_s22 = sshll.u32 %s3009_s27, 4  ;;  %s566_s25 = int_to_ptr.vmem [resolvable:$true] %s565_s25  ;;  %s587_s22 = int_to_ptr.vmem [resolvable:$true] %s586_s22 }
  0x9e   : > { %s2563_s24 = scalar_lea.hbm %s3774_s11, 16 }
  0x9f   : > { %p2564_p1 = scmp.ne.s32.totalorder %s3774_s11, %s2563_s24  ;;  %p2570_p0 = scmp.lt.u32.totalorder %s2563_s24, %s3774_s11 }
  0xa1   : > { %p2566_p3 = pnand %p2564_p1, %p3172_p8 }
  0xa3   : > { %p2567_p13 = pneg %p2566_p3 }
  0xa5   : > { %p2572_p2 = pnand %p2570_p0, %p2567_p13 }
  0xa7   : > { %2575 = shalt.err (!%p2572_p2)
}
  0xa8   : > { %s2576_s0 = scalar_lea.vmem %s566_s25, 16  ;;  %s2583_s3 = scalar_lea.vmem %s566_s25, 32 }
  0xa9   : > { %p2577_p5 = scmp.ne.s32.totalorder %s566_s25, %s2576_s0  ;;  %p2584_p4 = scmp.lt.s32.totalorder %s566_s25, %s566_s25 }
  0xaa   : > { %p2585_p10 = scmp.lt.s32.totalorder %s2583_s3, %s2576_s0 }
  0xab   : > { %p2579_p7 = pnand %p2577_p5, %p3172_p8 }
  0xac   : > { %p2586_p11 = por %p2585_p10, %p2584_p4 }
  0xad   : > { %p2580_p9 = pneg %p2579_p7 }
  0xaf   : > { %p2587_p12 = pnand %p2586_p11, %p2580_p9 }
  0xb1   : > { %2590 = shalt.err (!%p2587_p12)
}
  0xb2   : > { %2271 = dma.hbm_to_vmem [thread:$0]  (!%p3156_p6), %s3774_s11, 16, %s566_s25, [#allocation21]  }
  0xb3   : > { %s2591_s24 = scalar_lea.hbm %s3776_s13, 256 }
  0xb4   : > { %p2592_p1 = scmp.ne.s32.totalorder %s3776_s13, %s2591_s24  ;;  %p2598_p0 = scmp.lt.u32.totalorder %s2591_s24, %s3776_s13 }
  0xb6   : > { %p2594_p3 = pnand %p2592_p1, %p3172_p8 }
  0xb8   : > { %p2595_p13 = pneg %p2594_p3 }
  0xba   : > { %p2600_p2 = pnand %p2598_p0, %p2595_p13 }
  0xbc   : > { %2603 = shalt.err (!%p2600_p2)
}
  0xbd   : > { %s2604_s0 = scalar_lea.vmem %s587_s22, 256  ;;  %p2612_p4 = scmp.lt.s32.totalorder %s587_s22, %s587_s22 }
  0xbe   : > { %p2605_p5 = scmp.ne.s32.totalorder %s587_s22, %s2604_s0  ;;  %p2613_p10 = scmp.lt.s32.totalorder %s2604_s0, %s2604_s0 }
  0xc0   : > { %p2607_p7 = pnand %p2605_p5, %p3172_p8  ;;  %p2614_p11 = por %p2613_p10, %p2612_p4 }
  0xc2   : > { %p2608_p9 = pneg %p2607_p7 }
  0xc4   : > { %p2615_p12 = pnand %p2614_p11, %p2608_p9 }
  0xc6   : > { %2618 = shalt.err (!%p2615_p12)
}
  0xc7   : > { %2277 = dma.hbm_to_vmem [thread:$0]  (!%p3156_p6), %s3776_s13, 256, %s587_s22, [#allocation24], %s3004_s30, %s3004_s30, %s3005_s17  }
  0xc8   : > { %s3010_s16 = smov [#allocation26]   ;;  %s3011_s23 = smov [#allocation7]  }
  0xc9   : > { %s610_s27 = sshll.u32 %s3010_s16, 4  ;;  %s460_s20 = sshll.u32 %s3011_s23, 4  ;;  %s611_s27 = int_to_ptr.vmem [resolvable:$true] %s610_s27  ;;  %s461_s20 = int_to_ptr.vmem [resolvable:$true] %s460_s20 }
  0xca   : > { %s2619_s29 = scalar_lea.hbm %s3778_s15, 512 }
  0xcb   : > { %p2620_p1 = scmp.ne.s32.totalorder %s3778_s15, %s2619_s29  ;;  %p2626_p0 = scmp.lt.u32.totalorder %s2619_s29, %s3778_s15 }
  0xcd   : > { %p2622_p3 = pnand %p2620_p1, %p3172_p8 }
  0xcf   : > { %p2623_p13 = pneg %p2622_p3 }
  0xd1   : > { %p2628_p2 = pnand %p2626_p0, %p2623_p13 }
  0xd3   : > { %2631 = shalt.err (!%p2628_p2)
}
  0xd4   : > { %s2632_s22 = scalar_lea.vmem %s611_s27, 512  ;;  %p2640_p4 = scmp.lt.s32.totalorder %s611_s27, %s611_s27 }
  0xd5   : > { %p2633_p5 = scmp.ne.s32.totalorder %s611_s27, %s2632_s22  ;;  %p2641_p10 = scmp.lt.s32.totalorder %s2632_s22, %s2632_s22 }
  0xd7   : > { %p2635_p7 = pnand %p2633_p5, %p3172_p8  ;;  %p2642_p11 = por %p2641_p10, %p2640_p4 }
  0xd9   : > { %p2636_p9 = pneg %p2635_p7 }
  0xdb   : > { %p2643_p12 = pnand %p2642_p11, %p2636_p9 }
  0xdd   : > { %2646 = shalt.err (!%p2643_p12)
}
  0xde   : > { %2283 = dma.hbm_to_vmem [thread:$0]  (!%p3156_p6), %s3778_s15, 512, %s611_s27, [#allocation27], %s3004_s30, %s3004_s30, %s3005_s17  }
  0xdf   : > { %s3816_s2 = sld [smem:[#allocation48_spill]] }
  0xe5   : > { %s2647_s19 = scalar_lea.hbm %s3816_s2, 16 }
  0xe6   : > { %p2648_p1 = scmp.ne.s32.totalorder %s3816_s2, %s2647_s19  ;;  %p2654_p0 = scmp.lt.u32.totalorder %s2647_s19, %s3816_s2 }
  0xe8   : > { %p2650_p3 = pnand %p2648_p1, %p3172_p8 }
  0xea   : > { %p2651_p13 = pneg %p2650_p3 }
  0xec   : > { %p2656_p2 = pnand %p2654_p0, %p2651_p13 }
  0xee   : > { %2659 = shalt.err (!%p2656_p2)
}
  0xef   : > { %s2660_s25 = scalar_lea.vmem %s461_s20, 16  ;;  %s2667_s30 = scalar_lea.vmem %s461_s20, 32 }
  0xf0   : > { %p2661_p5 = scmp.ne.s32.totalorder %s461_s20, %s2660_s25  ;;  %p2668_p4 = scmp.lt.s32.totalorder %s461_s20, %s461_s20 }
  0xf1   : > { %p2669_p10 = scmp.lt.s32.totalorder %s2667_s30, %s2660_s25 }
  0xf2   : > { %p2663_p7 = pnand %p2661_p5, %p3172_p8 }
  0xf3   : > { %p2670_p11 = por %p2669_p10, %p2668_p4 }
  0xf4   : > { %p2664_p9 = pneg %p2663_p7 }
  0xf6   : > { %p2671_p12 = pnand %p2670_p11, %p2664_p9 }
  0xf8   : > { %2674 = shalt.err (!%p2671_p12)
}
  0xf9   : > { %2244 = dma.hbm_to_vmem [thread:$0]  (!%p3156_p6), %s3816_s2, 16, %s461_s20, [#allocation6]  }
  0xfa   : > { %s3012_s22 = smov [#allocation10]   ;;  %s3013_s16 = smov [#allocation13]  }
  0xfb   : > { %s484_s3 = sshll.u32 %s3012_s22, 4  ;;  %s508_s23 = sshll.u32 %s3013_s16, 4  ;;  %s485_s3 = int_to_ptr.vmem [resolvable:$true] %s484_s3  ;;  %s509_s23 = int_to_ptr.vmem [resolvable:$true] %s508_s23 }
  0xfc   : > { %s3817_s4 = sld [smem:[#allocation50_spill]] }
 0x102   : > { %s2675_s29 = scalar_lea.hbm %s3817_s4, 16 }
 0x103   : > { %p2676_p1 = scmp.ne.s32.totalorder %s3817_s4, %s2675_s29  ;;  %p2682_p0 = scmp.lt.u32.totalorder %s2675_s29, %s3817_s4 }
 0x105   : > { %p2678_p3 = pnand %p2676_p1, %p3172_p8 }
 0x107   : > { %p2679_p13 = pneg %p2678_p3 }
 0x109   : > { %p2684_p2 = pnand %p2682_p0, %p2679_p13 }
 0x10b   : > { %2687 = shalt.err (!%p2684_p2)
}
 0x10c   : > { %s2688_s20 = scalar_lea.vmem %s485_s3, 16  ;;  %s2695_s30 = scalar_lea.vmem %s485_s3, 32 }
 0x10d   : > { %p2689_p5 = scmp.ne.s32.totalorder %s485_s3, %s2688_s20  ;;  %p2696_p4 = scmp.lt.s32.totalorder %s485_s3, %s485_s3 }
 0x10e   : > { %p2697_p10 = scmp.lt.s32.totalorder %s2695_s30, %s2688_s20 }
 0x10f   : > { %p2691_p7 = pnand %p2689_p5, %p3172_p8 }
 0x110   : > { %p2698_p11 = por %p2697_p10, %p2696_p4 }
 0x111   : > { %p2692_p9 = pneg %p2691_p7 }
 0x113   : > { %p2699_p12 = pnand %p2698_p11, %p2692_p9 }
 0x115   : > { %2702 = shalt.err (!%p2699_p12)
}
 0x116   : > { %2250 = dma.hbm_to_vmem [thread:$0]  (!%p3156_p6), %s3817_s4, 16, %s485_s3, [#allocation9]  }
 0x117   : > { %s2703_s24 = scalar_lea.hbm %s3769_s6, 16 }
 0x118   : > { %p2704_p1 = scmp.ne.s32.totalorder %s3769_s6, %s2703_s24  ;;  %p2710_p0 = scmp.lt.u32.totalorder %s2703_s24, %s3769_s6 }
 0x11a   : > { %p2706_p3 = pnand %p2704_p1, %p3172_p8 }
 0x11c   : > { %p2707_p13 = pneg %p2706_p3 }
 0x11e   : > { %p2712_p2 = pnand %p2710_p0, %p2707_p13 }
 0x120   : > { %2715 = shalt.err (!%p2712_p2)
}
 0x121   : > { %s2716_s0 = scalar_lea.vmem %s509_s23, 16  ;;  %s2723_s3 = scalar_lea.vmem %s509_s23, 32 }
 0x122   : > { %p2717_p5 = scmp.ne.s32.totalorder %s509_s23, %s2716_s0  ;;  %p2724_p4 = scmp.lt.s32.totalorder %s509_s23, %s509_s23 }
 0x123   : > { %p2725_p10 = scmp.lt.s32.totalorder %s2723_s3, %s2716_s0 }
 0x124   : > { %p2719_p7 = pnand %p2717_p5, %p3172_p8 }
 0x125   : > { %p2726_p11 = por %p2725_p10, %p2724_p4 }
 0x126   : > { %p2720_p9 = pneg %p2719_p7 }
 0x128   : > { %p2727_p12 = pnand %p2726_p11, %p2720_p9 }
 0x12a   : > { %2730 = shalt.err (!%p2727_p12)
}
 0x12b   : > { %2256 = dma.hbm_to_vmem [thread:$0]  (!%p3156_p6), %s3769_s6, 16, %s509_s23, [#allocation12]  }
 0x12c   : > { %s3014_s30 = smov [#allocation16]   ;;  %s3015_s27 = smov [#allocation19]  }
 0x12d   : > { %s532_s17 = sshll.u32 %s3014_s30, 4  ;;  %s554_s22 = sshll.u32 %s3015_s27, 4  ;;  %s533_s17 = int_to_ptr.vmem [resolvable:$true] %s532_s17  ;;  %s555_s22 = int_to_ptr.vmem [resolvable:$true] %s554_s22 }
 0x12e   : > { %s2731_s19 = scalar_lea.hbm %s3771_s8, 16 }
 0x12f   : > { %p2732_p1 = scmp.ne.s32.totalorder %s3771_s8, %s2731_s19  ;;  %p2738_p0 = scmp.lt.u32.totalorder %s2731_s19, %s3771_s8 }
 0x131   : > { %p2734_p3 = pnand %p2732_p1, %p3172_p8 }
 0x133   : > { %p2735_p13 = pneg %p2734_p3 }
 0x135   : > { %p2740_p2 = pnand %p2738_p0, %p2735_p13 }
 0x137   : > { %2743 = shalt.err (!%p2740_p2)
}
 0x138   : > { %s2744_s23 = scalar_lea.vmem %s533_s17, 16  ;;  %s2751_s3 = scalar_lea.vmem %s533_s17, 32 }
 0x139   : > { %p2745_p5 = scmp.ne.s32.totalorder %s533_s17, %s2744_s23  ;;  %p2752_p4 = scmp.lt.s32.totalorder %s533_s17, %s533_s17 }
 0x13a   : > { %p2753_p10 = scmp.lt.s32.totalorder %s2751_s3, %s2744_s23 }
 0x13b   : > { %p2747_p7 = pnand %p2745_p5, %p3172_p8 }
 0x13c   : > { %p2754_p11 = por %p2753_p10, %p2752_p4 }
 0x13d   : > { %p2748_p9 = pneg %p2747_p7 }
 0x13f   : > { %p2755_p12 = pnand %p2754_p11, %p2748_p9 }
 0x141   : > { %2758 = shalt.err (!%p2755_p12)
}
 0x142   : > { %2262 = dma.hbm_to_vmem [thread:$0]  (!%p3156_p6), %s3771_s8, 16, %s533_s17, [#allocation15]  }
 0x143   : > { %s2759_s16 = scalar_lea.hbm %s3773_s10, 16 }
 0x144   : > { %p2760_p1 = scmp.ne.s32.totalorder %s3773_s10, %s2759_s16  ;;  %p2766_p0 = scmp.lt.u32.totalorder %s2759_s16, %s3773_s10 }
 0x146   : > { %p2762_p3 = pnand %p2760_p1, %p3172_p8 }
 0x148   : > { %p2763_p13 = pneg %p2762_p3 }
 0x14a   : > { %p2768_p2 = pnand %p2766_p0, %p2763_p13 }
 0x14c   : > { %2771 = shalt.err (!%p2768_p2)
}
 0x14d   : > { %s2772_s21 = scalar_lea.vmem %s555_s22, 16  ;;  %s2779_s17 = scalar_lea.vmem %s555_s22, 32 }
 0x14e   : > { %p2773_p5 = scmp.ne.s32.totalorder %s555_s22, %s2772_s21  ;;  %p2780_p4 = scmp.lt.s32.totalorder %s555_s22, %s555_s22 }
 0x14f   : > { %p2781_p10 = scmp.lt.s32.totalorder %s2779_s17, %s2772_s21 }
 0x150   : > { %p2775_p7 = pnand %p2773_p5, %p3172_p8 }
 0x151   : > { %p2782_p11 = por %p2781_p10, %p2780_p4 }
 0x152   : > { %p2776_p9 = pneg %p2775_p7 }
 0x154   : > { %p2783_p12 = pnand %p2782_p11, %p2776_p9 }
 0x156   : > { %2786 = shalt.err (!%p2783_p12)
}
 0x157   : > { %2268 = dma.hbm_to_vmem [thread:$0]  (!%p3156_p6), %s3773_s10, 16, %s555_s22, [#allocation18]  }
 0x158   : > { %s3016_s3 = smov [#allocation22]   ;;  %s3017_s20 = smov [#allocation25]  }
 0x159   : > { %s576_s25 = sshll.u32 %s3016_s3, 4  ;;  %s600_s30 = sshll.u32 %s3017_s20, 4  ;;  %s577_s25 = int_to_ptr.vmem [resolvable:$true] %s576_s25  ;;  %s601_s30 = int_to_ptr.vmem [resolvable:$true] %s600_s30 }
 0x15a   : > { %s2787_s24 = scalar_lea.hbm %s3775_s12, 16 }
 0x15b   : > { %p2788_p1 = scmp.ne.s32.totalorder %s3775_s12, %s2787_s24  ;;  %p2794_p0 = scmp.lt.u32.totalorder %s2787_s24, %s3775_s12 }
 0x15d   : > { %p2790_p3 = pnand %p2788_p1, %p3172_p8 }
 0x15f   : > { %p2791_p13 = pneg %p2790_p3 }
 0x161   : > { %p2796_p2 = pnand %p2794_p0, %p2791_p13 }
 0x163   : > { %2799 = shalt.err (!%p2796_p2)
}
 0x164   : > { %s2800_s22 = scalar_lea.vmem %s577_s25, 16  ;;  %s2807_s17 = scalar_lea.vmem %s577_s25, 32 }
 0x165   : > { %p2801_p5 = scmp.ne.s32.totalorder %s577_s25, %s2800_s22  ;;  %p2808_p4 = scmp.lt.s32.totalorder %s577_s25, %s577_s25 }
 0x166   : > { %p2809_p10 = scmp.lt.s32.totalorder %s2807_s17, %s2800_s22 }
 0x167   : > { %p2803_p7 = pnand %p2801_p5, %p3172_p8 }
 0x168   : > { %p2810_p11 = por %p2809_p10, %p2808_p4 }
 0x169   : > { %p2804_p9 = pneg %p2803_p7 }
 0x16b   : > { %p2811_p12 = pnand %p2810_p11, %p2804_p9 }
 0x16d   : > { %2814 = shalt.err (!%p2811_p12)
}
 0x16e   : > { %2274 = dma.hbm_to_vmem [thread:$0]  (!%p3156_p6), %s3775_s12, 16, %s577_s25, [#allocation21]  }
 0x16f   : > { %s2815_s27 = scalar_lea.hbm %s3777_s14, 16 }
 0x170   : > { %p2816_p1 = scmp.ne.s32.totalorder %s3777_s14, %s2815_s27  ;;  %p2822_p0 = scmp.lt.u32.totalorder %s2815_s27, %s3777_s14 }
 0x172   : > { %p2818_p3 = pnand %p2816_p1, %p3172_p8 }
 0x174   : > { %p2819_p13 = pneg %p2818_p3 }
 0x176   : > { %p2824_p2 = pnand %p2822_p0, %p2819_p13 }
 0x178   : > { %2827 = shalt.err (!%p2824_p2)
}
 0x179   : > { %s2828_s26 = scalar_lea.vmem %s601_s30, 16  ;;  %s2835_s25 = scalar_lea.vmem %s601_s30, 32 }
 0x17a   : > { %p2829_p5 = scmp.ne.s32.totalorder %s601_s30, %s2828_s26  ;;  %p2836_p4 = scmp.lt.s32.totalorder %s601_s30, %s601_s30 }
 0x17b   : > { %p2837_p10 = scmp.lt.s32.totalorder %s2835_s25, %s2828_s26 }
 0x17c   : > { %p2831_p7 = pnand %p2829_p5, %p3172_p8 }
 0x17d   : > { %p2838_p11 = por %p2837_p10, %p2836_p4 }
 0x17e   : > { %p2832_p9 = pneg %p2831_p7 }
 0x180   : > { %p2839_p12 = pnand %p2838_p11, %p2832_p9 }
 0x182   : > { %2842 = shalt.err (!%p2839_p12)
}
 0x183   : > { %2280 = dma.hbm_to_vmem [thread:$0]  (!%p3156_p6), %s3777_s14, 16, %s601_s30, [#allocation24]  }
 0x184   : > { %s3018_s17 = smov [#allocation28]   ;;  %s3818_s20 = sld [smem:[#allocation52_spill]] }
 0x185   : > { %s624_s0 = sshll.u32 %s3018_s17, 4  ;;  %s625_s0 = int_to_ptr.vmem [resolvable:$true] %s624_s0 }
 0x18a   : > { %s2843_s27 = scalar_lea.hbm %s3818_s20, 16 }
 0x18b   : > { %p2844_p1 = scmp.ne.s32.totalorder %s3818_s20, %s2843_s27  ;;  %p2850_p0 = scmp.lt.u32.totalorder %s2843_s27, %s3818_s20 }
 0x18d   : > { %p2846_p3 = pnand %p2844_p1, %p3172_p8 }
 0x18f   : > { %p2847_p13 = pneg %p2846_p3 }
 0x191   : > { %p2852_p2 = pnand %p2850_p0, %p2847_p13 }
 0x193   : > { %2855 = shalt.err (!%p2852_p2)
}
 0x194   : > { %s2856_s30 = scalar_lea.vmem %s625_s0, 16  ;;  %s2863_s26 = scalar_lea.vmem %s625_s0, 32 }
 0x195   : > { %p2857_p5 = scmp.ne.s32.totalorder %s625_s0, %s2856_s30  ;;  %p2864_p4 = scmp.lt.s32.totalorder %s625_s0, %s625_s0 }
 0x196   : > { %p2865_p10 = scmp.lt.s32.totalorder %s2863_s26, %s2856_s30 }
 0x197   : > { %p2859_p7 = pnand %p2857_p5, %p3172_p8 }
 0x198   : > { %p2866_p11 = por %p2865_p10, %p2864_p4 }
 0x199   : > { %p2860_p9 = pneg %p2859_p7 }
 0x19b   : > { %p2867_p12 = pnand %p2866_p11, %p2860_p9 }
 0x19d   : > { %2870 = shalt.err (!%p2867_p12)
}
 0x19e   : > { %s3819_s22 = sld [smem:[#allocation43_spill]]  ;;  %s3820_s17 = sld [smem:[#allocation42_spill]] }
 0x19f   : > { %s3821_s23 = sld [smem:[#allocation41_spill]]  ;;  %s3822_s18 = sld [smem:[#allocation40_spill]] }
 0x1a0   : > { %s3823_s3 = sld [smem:[#allocation44_spill]] }
 0x1a1   : > { %2286 = dma.hbm_to_vmem [thread:$0]  (!%p3156_p6), %s3818_s20, 16, %s625_s0, [#allocation27]  }
 0x1a4   : > { %s1952_s27 = sadd.s32 4294967294, %s3819_s22   ;;  %s3493_s1 = sadd.s32 1, %s3819_s22  }
 0x1a5   : > { %s45_s16 = ssub.s32 %s3819_s22, %s3493_s1  ;;  %s48_s24 = sadd.s32 1, %s3820_s17 }
 0x1a6   : > { %p46_p8 = scmp.eq.s32.totalorder %s45_s16, 0  ;;  %p55_p1 = scmp.ne.s32.totalorder %s3820_s17, %s3821_s23 }
 0x1a7   : > { %p56_p3 = scmp.eq.s32.totalorder %s3819_s22, 0  ;;  %p61_p13 = scmp.ne.s32.totalorder %s3821_s23, %s3822_s18 }
 0x1a8   : > { %s3504_s19 = scalar_select %p46_p8, %s3820_s17, %s48_s24  }
 0x1a9   : > { %p3506_p0 = por %p56_p3, %p55_p1  ;;  %p3825_p2 = scmp.eq.s32.totalorder %s3823_s3, 0 }
 0x1aa   : > { %p421_p5 = scmp.eq.s32.totalorder %s3823_s3, 1  ;;  %p427_p7 = scmp.eq.s32.totalorder %s1952_s27, 1 }
 0x1ab   : > { %p3512_p6 = por %p3825_p2, %p61_p13  ;;  %p2311_p9 = scmp.lt.s32.totalorder %s3819_s22, 2 }
 0x1ac   : > { %s635_s30 = sand.u32 1, %s3820_s17   ;;  %p3519_p4 = por %p421_p5, %p55_p1 }
 0x1ad   : > { %p3523_p10 = por %p427_p7, %p61_p13  ;;  %s1971_s21 = sshll.u32 %s635_s30, 3 }
 0x1ae   : > { %s3827_s26 = scalar_select %p3519_p4, 1, 0 }
 0x1af   : > { %s3828_s25 = scalar_select %p3523_p10, 1, 0 }
 0x1b0   : > { %s1972_s23 = sshll.u32 %s3819_s22, 7  ;;  %s3829_s24 = sld [smem:[#allocation46_spill]] }
 0x1b1   : > { %s639_s17 = scalar_lea.vmem [#allocation2], %s1971_s21  ;;  %p3537_p11 = pnand %p2311_p9, %p3506_p0 }
 0x1b2   : > { %s646_s3 = sshll.u32 %s639_s17, 4  ;;  %s636_s22 = scalar_lea.sflag [#allocation3], %s635_s30  ;;  %s3533_s3 = int_to_ptr.vmem [resolvable:$true] %s646_s3 }
 0x1b3   : > { %p2873_p8 = pneg %p3537_p11 }
 0x1b6   : > { %s3830_s2 = smov %s3829_s24  ;;  %s3531_s4 = scalar_lea.hbm %s3829_s24, %s1972_s23 }
 0x1b7   : > { %s2871_s5 = scalar_lea.hbm %s3531_s4, 128  ;;  %s2876_s18 = scalar_lea.hbm %s3830_s2, 256 }
 0x1b8   : > { %p2872_p12 = scmp.ne.s32.totalorder %s3531_s4, %s2871_s5  ;;  %p2877_p13 = scmp.lt.u32.totalorder %s3531_s4, %s3830_s2 }
 0x1b9   : > { %p2878_p0 = scmp.lt.u32.totalorder %s2876_s18, %s2871_s5  ;;  %p2880_p5 = scmp.lt.u32.totalorder %s2871_s5, %s3531_s4 }
 0x1ba   : > { %p2874_p1 = pnand %p2873_p8, %p2872_p12 }
 0x1bb   : > { %p2879_p2 = por %p2878_p0, %p2877_p13 }
 0x1bc   : > { %p2875_p3 = pneg %p2874_p1 }
 0x1bd   : > { %p2881_p7 = por %p2880_p5, %p2879_p2 }
 0x1bf   : > { %p2882_p9 = pnand %p2881_p7, %p2875_p3 }
 0x1c1   : > { %2885 = shalt.err (!%p2882_p9)
}
 0x1c2   : > { %s2886_s30 = scalar_lea.vmem %s3533_s3, 128  ;;  %s3019_s24 = smov [#allocation2]  }
 0x1c3   : > { %p2887_p12 = scmp.ne.s32.totalorder %s3533_s3, %s2886_s30  ;;  %s2891_s17 = sshll.u32 %s3019_s24, 4  ;;  %s2892_s17 = int_to_ptr.vmem [resolvable:$false] %s2891_s17 }
 0x1c4   : > { %s2893_s21 = scalar_lea.vmem %s2892_s17, 256  ;;  %p2894_p4 = scmp.lt.s32.totalorder %s3533_s3, %s2892_s17 }
 0x1c5   : > { %p2889_p1 = pnand %p2887_p12, %p2873_p8  ;;  %p2895_p13 = scmp.lt.s32.totalorder %s2893_s21, %s2886_s30 }
 0x1c7   : > { %p2890_p10 = pneg %p2889_p1  ;;  %p2896_p0 = por %p2895_p13, %p2894_p4 }
 0x1c9   : > { %p2897_p2 = pnand %p2896_p0, %p2890_p10 }
 0x1cb   : > { %2900 = shalt.err (!%p2897_p2)
}
 0x1cc   : > { %2290 = dma.hbm_to_vmem [thread:$0]  (!%p3537_p11), %s3531_s4, 128, %s3533_s3, %s636_s22  }
 0x1cd   : > { %s3832_s5 = sld [smem:[#allocation45_spill]] }
 0x1d3   : > { %p3833_p3 = scmp.ne.s32.totalorder %s3832_s5, 0 }
 0x1d4   : > { %s3834_s23 = sld [smem:[#allocation41_spill]] (!%p3833_p3) }
 0x1d5   : > { %655 = sbr.rel (%p3833_p3) target bundleno = 3040 (0xbe0), region = 88 }
 0x1da   : > { %s3569_s18 = sand.u32 (!%p3833_p3), 1, %s3834_s23  }
 0x1db   : > { %s1974_s29 = sshll.u32 (!%p3833_p3), %s3569_s18, 3  ;;  %s658_s16 = scalar_lea.sflag (!%p3833_p3), [#allocation3], %s3569_s18 }
 0x1dc   : > { %s3575_s30 = scalar_lea.vmem [#allocation2], %s1974_s29 }
 0x1dd   : > { %2946 = dma.done.wait (%p3512_p6), %s658_s16, 128  }
 0x1de   : > { %2948 = vsyncadd (%p3512_p6), %s658_s16, 4294967168  ;;  %s3835_s4 = sld [smem:[#allocation44_spill]] }
 0x1e4   : > { %p3836_p4 = scmp.eq.s32.totalorder %s3835_s4, 0 }
 0x1e6   : > { %2950 = dma.done.wait (%p3836_p4), [#allocation6], 272   ;;  %p3837_p10 = pmov %p3836_p4 }
 0x1e7   : > { %p3838_p11 = pmov %p3836_p4 }
 0x1e8   : > { %2952 = vsyncadd (%p3837_p10), [#allocation6], 4294967024 }
 0x1e9   : > { %2954 = dma.done.wait (%p3838_p11), [#allocation9], 272   ;;  %p3839_p8 = pmov %p3836_p4 }
 0x1ea   : > { %p3840_p5 = pmov %p3836_p4 }
 0x1eb   : > { %2956 = vsyncadd (%p3839_p8), [#allocation9], 4294967024 }
 0x1ec   : > { %2958 = dma.done.wait (%p3840_p5), [#allocation12], 272   ;;  %p3841_p7 = pmov %p3836_p4 }
 0x1ed   : > { %p3842_p6 = pmov %p3836_p4 }
 0x1ee   : > { %2960 = vsyncadd (%p3841_p7), [#allocation12], 4294967024 }
 0x1ef   : > { %2962 = dma.done.wait (%p3842_p6), [#allocation15], 272   ;;  %p3843_p9 = pmov %p3836_p4 }
 0x1f0   : > { %p3844_p12 = pmov %p3836_p4 }
 0x1f1   : > { %2964 = vsyncadd (%p3843_p9), [#allocation15], 4294967024 }
 0x1f2   : > { %2966 = dma.done.wait (%p3844_p12), [#allocation18], 32   ;;  %p3845_p1 = pmov %p3836_p4 }
 0x1f4   : > { %2968 = vsyncadd (%p3845_p1), [#allocation18], 4294967264  ;;  %p3846_p13 = pmov %p3845_p1 }
 0x1f5   : > { %p3847_p0 = pmov %p3845_p1 }
 0x1f6   : > { %2970 = dma.done.wait (%p3846_p13), [#allocation21], 32  }
 0x1f7   : > { %2972 = vsyncadd (%p3847_p0), [#allocation21], 4294967264  ;;  %p3848_p2 = pmov %p3847_p0 }
 0x1f8   : > { %p3849_p3 = pmov %p3847_p0 }
 0x1f9   : > { %2974 = dma.done.wait (%p3848_p2), [#allocation24], 272  }
 0x1fa   : > { %2976 = vsyncadd (%p3849_p3), [#allocation24], 4294967024  ;;  %p3850_p4 = pmov %p3847_p0 }
 0x1fb   : > { %p3851_p10 = pmov %p3847_p0 }
 0x1fc   : > { %2978 = dma.done.wait (%p3850_p4), [#allocation27], 528  }
 0x1fd   : > { %2980 = vsyncadd (%p3851_p10), [#allocation27], 4294966768  ;;  %v3020_v0 = vmov 0.0   ;;  %vm3021_vm0 = vmmov 0   ;;  %v2387_v1 = vld [vmem:[#allocation8] sm:$0xff]   ;;  %v2388_v2 = vld [vmem:[#allocation5] sm:$0xff]  }
 0x1fe   : > { %2078 = vmatprep.subr.bf16.mxu1 %v3020_v0  ;;  %2070 = vmatprep.subr.bf16.mxu0 %v3020_v0  ;;  %v2389_v3 = vld [vmem:[#allocation8 + $0x8] sm:$0xff]   ;;  %vm802_vm1 = vcmask 261120   ;;  %v2390_v5 = vld [vmem:[#allocation5 + $0x8] sm:$0xff]   ;;  %v1996_v7 = vld [vmem:[#allocation10] ss:$0 sm:$0xff]  ;;  %vm975_vm2 = vcmask 64512  }
 0x1ff   : > { %2082 = vmatprep.mubr.msk.bf16.mxu1 %vm3021_vm0, %v3020_v0  ;;  %2074 = vmatprep.mubr.msk.bf16.mxu0 %vm3021_vm0, %v3020_v0  ;;  %v3621_v4 = vld [vmem:[%s3575_s30] sm:$0xff]  ;;  %s3022_s0 = smov 112   ;;  %s3023_s3 = smov 120   ;;  %v2391_v22 = vld [vmem:[#allocation11] sm:$0xff]   ;;  %vm1037_vm3 = vcmask 1043456   ;;  %vm1427_vm4 = vcmask 130048  }
 0x200   : > { %2079 = vmatpush3.bf16.msra.mxu1 %v2387_v1  ;;  %2071 = vmatpush3.bf16.msra.mxu0 %v2388_v2  ;;  %v778_v6 = vpack.c.bf16 %v3621_v4, %v3621_v4  ;;  %v1992_v8 = vld [vmem:[#allocation7] ss:$0 sm:$0xff]  ;;  %s3024_s27 = smov 104   ;;  %v2000_v38 = vld [vmem:[#allocation13] ss:$0 sm:$0xff]  ;;  %s3025_s22 = smov 8  }
 0x201   : > { %2080 = vmatprep.subr.bf16.mxu1 %v3020_v0  ;;  %2072 = vmatprep.subr.bf16.mxu0 %v3020_v0  ;;  %v2392_v23 = vld [vmem:[#allocation11 + $0x8] sm:$0xff]   ;;  %s3026_s24 = smov 16   ;;  %s3027_s17 = smov 24   ;;  %vm1429_vm5 = vcmask 195584   ;;  %vm1641_vm6 = vcmask 523264  }
 0x202   : > { %s2031_s21 = sshll.u32 %s3835_s4, 7  ;;  %s775_s5 = scalar_lea.vmem [#allocation29], %s1974_s29 }
 0x203   : > { %s1730_s23 = sshll.u32 %s775_s5, 4  ;;  %p3853_p8 = scmp.ne.s32.totalorder %s3827_s26, 0  ;;  %s3720_s23 = int_to_ptr.vmem [resolvable:$true] %s1730_s23 }
 0x204   : > { %2081 = vmatpush3.bf16.msra.mxu1 %v2389_v3  ;;  %2073 = vmatpush3.bf16.msra.mxu0 %v2390_v5  ;;  %s3028_s29 = smov [#allocation29]  }
 0x205   : > { %2094 = vmatprep.subr.bf16.mxu1 %v3020_v0  ;;  %2086 = vmatprep.subr.bf16.mxu0 %v3020_v0  ;;  %s2905_s4 = sshll.u32 %s3028_s29, 4  ;;  %s2906_s4 = int_to_ptr.vmem [resolvable:$false] %s2905_s4 }
 0x206   : > { %p2908_p6 = scmp.lt.s32.totalorder %s3720_s23, %s2906_s4 }
 0x207   : > { %2083 = vmatmul.mubr.msk.bf16.vlgmr.msra.gmra.mrb[0].mxu1 %vm802_vm1, %v778_v6  ;;  %2075 = vmatmul.mubr.msk.bf16.vlgmr.msra.gmra.mrb[0].mxu0 %vm802_vm1, %v778_v6 }
 0x208   : > { %2096 = vmatprep.mubr.msk.bf16.mxu1 %vm3021_vm0, %v3020_v0  ;;  %2090 = vmatprep.mubr.msk.bf16.mxu0 %vm3021_vm0, %v3020_v0 }
 0x209   : > { %2087 = vmatpush3.bf16.msra.mxu0 %v2391_v22 }
 0x20a   : > { %2088 = vmatprep.subr.bf16.mxu0 %v3020_v0 }
 0x20d   : > { %2089 = vmatpush3.bf16.msra.mxu0 %v2392_v23 }
 0x20e   : > { %2100 = vmatprep.subr.bf16.mxu0 %v3020_v0 }
 0x210   : > { %2091 = vmatmul.mubr.msk.bf16.vlgmr.msra.gmra.mrb[4].mxu0 %vm802_vm1, %v778_v6 }
 0x211   : > { %2102 = vmatprep.mubr.msk.bf16.mxu0 %vm3021_vm0, %v3020_v0 }
 0x2da   : > { %v903_v9 = vpop.f32.mrb[0].mxu1  ;;  %v840_v12 = vpop.f32.mrb[0].mxu0 }
 0x2db   : > { %v904_v10 = vadd.f32 %v1996_v7, %v903_v9  ;;  %v2084_v11 = vpop.f32.mrb[1].mxu1  ;;  %v841_v14 = vadd.f32 %v1992_v8, %v840_v12  ;;  %v2076_v15 = vpop.f32.mrb[1].mxu0 }
 0x2dc   : > { %v906_v13 = vpop.f32.mrb[2].mxu1  ;;  %v843_v18 = vpop.f32.mrb[2].mxu0 }
 0x2dd   : > { %v973_v16 = vpack.c.bf16 %v904_v10, %v904_v10  ;;  %v2085_v17 = vpop.f32.mrb[3].mxu1  ;;  %v2077_v19 = vpop.f32.mrb[3].mxu0  ;;  %v972_v20 = vpack.c.bf16 %v841_v14, %v841_v14 }
 0x2df   : > { %1196 = vrot.lane.b32.xlu1 %v973_v16, %s3022_s0  ;;  %1085 = vrot.lane.b32.xlu0 %v973_v16, %s3023_s3  ;;  %v980_v21 = vsel %vm975_vm2, %v973_v16, 0 }
 0x2e0   : > { %2095 = vmatpush3.bf16.xpose.msra.mxu1 %v980_v21 }
 0x2e1   : > { %2106 = vmatprep.subr.bf16.mxu1 %v3020_v0 }
 0x2e3   : > { %1194 = vrot.lane.b32.xlu1 %v972_v20, %s3022_s0  ;;  %1082 = vrot.lane.b32.xlu0 %v972_v20, %s3023_s3  ;;  %v966_v39 = vpop.f32.mrb[4].mxu0 }
 0x2e4   : > { %v967_v40 = vadd.f32 %v2000_v38, %v966_v39  ;;  %v2092_v41 = vpop.f32.mrb[5].mxu0 }
 0x2e5   : > { %v969_v42 = vpop.f32.mrb[6].mxu0 }
 0x2e6   : > { %v974_v43 = vpack.c.bf16 %v967_v40, %v967_v40  ;;  %v2093_v44 = vpop.f32.mrb[7].mxu0 }
 0x2e7   : > { %1304 = vrot.lane.b32.xlu1 %v972_v20, %s3024_s27  ;;  %1306 = vrot.lane.b32.xlu0 %v973_v16, %s3024_s27 }
 0x2e8   : > { %2097 = vmatmul.mubr.msk.bf16.vlgmr.msra.gmra.mrb[4].mxu1 %vm975_vm2, %v972_v20  ;;  %v1039_v45 = vsel %vm1037_vm3, %v974_v43, 0 }
 0x2e9   : > { %2108 = vmatprep.mubr.msk.bf16.mxu1 %vm3021_vm0, %v3020_v0  ;;  %2101 = vmatpush3.bf16.msra.mxu0 %v1039_v45  ;;  %v2393_v45 = vld [vmem:[#allocation14] sm:$0xff]  }
 0x2ea   : > { %2112 = vmatprep.subr.bf16.mxu0 %v3020_v0 }
 0x351   : > { %v1086_v24 = vpop.permute.xlu0 %1085  ;;  %v1197_v26 = vpop.permute.xlu1 %1196 }
 0x352   : > { %v1091_v25 = vsel %vm975_vm2, %v1086_v24, 0  ;;  %v1202_v28 = vsel %vm975_vm2, %v1197_v26, 0 }
 0x353   : > { %2107 = vmatpush3.bf16.xpose.msra.mxu1 %v1091_v25 }
 0x354   : > { %2118 = vmatprep.subr.bf16.mxu1 %v3020_v0 }
 0x355   : > { %v1083_v27 = vpop.permute.xlu0 %1082  ;;  %v1195_v30 = vpop.permute.xlu1 %1194 }
 0x359   : > { %v1307_v29 = vpop.permute.xlu0 %1306  ;;  %v1305_v32 = vpop.permute.xlu1 %1304 }
 0x35a   : > { %2109 = vmatmul.mubr.msk.bf16.vlgmr.msra.gmra.mrb[8].mxu1 %vm975_vm2, %v1083_v27  ;;  %v1312_v31 = vsel %vm975_vm2, %v1307_v29, 0 }
 0x35b   : > { %2119 = vmatpush3.bf16.xpose.msra.mxu1 %v1202_v28  ;;  %2120 = vmatprep.mubr.msk.bf16.mxu1 %vm3021_vm0, %v3020_v0 }
 0x35c   : > { %2130 = vmatprep.subr.bf16.mxu1 %v3020_v0 }
 0x362   : > { %2121 = vmatmul.mubr.msk.bf16.vlgmr.msra.gmra.mrb[12].mxu1 %vm975_vm2, %v1195_v30 }
 0x363   : > { %2131 = vmatpush3.bf16.xpose.msra.mxu1 %v1312_v31  ;;  %2132 = vmatprep.mubr.msk.bf16.mxu1 %vm3021_vm0, %v3020_v0 }
 0x364   : > { %2142 = vmatprep.subr.bf16.mxu1 %v3020_v0 }
 0x36a   : > { %2133 = vmatmul.mubr.msk.bf16.vlgmr.msra.gmra.mrb[16].mxu1 %vm975_vm2, %v1305_v32 }
 0x36b   : > { %2146 = vmatprep.mubr.msk.bf16.mxu1 %vm3021_vm0, %v3020_v0  ;;  %2143 = vmatpush3.bf16.msra.mxu1 %v2393_v45 }
 0x36c   : > { %2144 = vmatprep.subr.bf16.mxu1 %v3020_v0 }
 0x3bb   : > { %v1016_v33 = vpop.f32.mrb[4].mxu1 }
 0x3bc   : > { %v2098_v34 = vpop.f32.mrb[5].mxu1  ;;  %v1022_v35 = vsel %vm975_vm2, %v1016_v33, -inf }
 0x3bd   : > { %1023 = vmax.xlane.f32.xlu0 %v1022_v35  ;;  %v1019_v36 = vpop.f32.mrb[6].mxu1 }
 0x3be   : > { %v2099_v37 = vpop.f32.mrb[7].mxu1 }
 0x42d   : > { %v1127_v46 = vpop.f32.mrb[8].mxu1 }
 0x42e   : > { %v2110_v47 = vpop.f32.mrb[9].mxu1  ;;  %v1133_v48 = vsel %vm975_vm2, %v1127_v46, -inf }
 0x42f   : > { %1134 = vmax.xlane.f32.xlu1 %v1133_v48  ;;  %v1130_v49 = vpop.f32.mrb[10].mxu1 }
 0x430   : > { %v2111_v50 = vpop.f32.mrb[11].mxu1 }
 0x431   : > { %v2394_v50 = vld [vmem:[#allocation14 + $0x8] sm:$0xff]  }
 0x432   : > { %2145 = vmatpush3.bf16.msra.mxu1 %v2394_v50 }
 0x433   : > { %2158 = vmatprep.subr.bf16.mxu1 %v3020_v0 }
 0x435   : > { %v1238_v51 = vpop.f32.mrb[12].mxu1 }
 0x436   : > { %v2122_v52 = vpop.f32.mrb[13].mxu1  ;;  %v1244_v53 = vsel %vm975_vm2, %v1238_v51, -inf }
 0x437   : > { %1245 = vmax.xlane.f32.xlu0 %v1244_v53  ;;  %v1241_v54 = vpop.f32.mrb[14].mxu1 }
 0x438   : > { %v2123_v55 = vpop.f32.mrb[15].mxu1 }
 0x43d   : > { %v1348_v56 = vpop.f32.mrb[16].mxu1 }
 0x43e   : > { %v2134_v57 = vpop.f32.mrb[17].mxu1  ;;  %v1354_v58 = vsel %vm975_vm2, %v1348_v56, -inf }
 0x43f   : > { %1355 = vmax.xlane.f32.xlu0 %v1354_v58  ;;  %v1351_v59 = vpop.f32.mrb[18].mxu1 }
 0x440   : > { %v2135_v60 = vpop.f32.mrb[19].mxu1 }
 0x44a   : > { %v1024_v61 = vpop.xlane.xlu0 %1023 }
 0x44b   : > { %v1025_v62 = vsub.f32 %v1016_v33, %v1024_v61 }
 0x44d   : > { %v1026_v63 = vmul.f32 1.442695, %v1025_v62 }
 0x44f   : > { %2401 = vpow2.f32 %v1026_v63 }
 0x459   : > { %v2402_v1 = vpop.eup %2401 }
 0x45a   : > { %v1028_v2 = vsel %vm975_vm2, %v2402_v1, 0.0 }
 0x45b   : > { %1029 = vadd.xlane.f32.xlu1 %v1028_v2 }
 0x46c   : > { %1146 = vrot.lane.b32.xlu1 %v974_v43, %s3023_s3 }
 0x4bc   : > { %v1135_v3 = vpop.xlane.xlu1 %1134 }
 0x4bd   : > { %v1136_v5 = vsub.f32 %v1127_v46, %v1135_v3  ;;  %v2012_v3 = vld [vmem:[#allocation16] ss:$0 sm:$0xff] }
 0x4bf   : > { %v1137_v6 = vmul.f32 1.442695, %v1136_v5 }
 0x4c1   : > { %2403 = vpow2.f32 %v1137_v6 }
 0x4c4   : > { %v1246_v7 = vpop.xlane.xlu0 %1245 }
 0x4c5   : > { %v1247_v8 = vsub.f32 %v1238_v51, %v1246_v7 }
 0x4c7   : > { %v1248_v9 = vmul.f32 1.442695, %v1247_v8 }
 0x4c9   : > { %2405 = vpow2.f32 %v1248_v9 }
 0x4cb   : > { %v2404_v10 = vpop.eup %2403 }
 0x4cc   : > { %v1356_v11 = vpop.xlane.xlu0 %1355  ;;  %v1139_v12 = vsel %vm975_vm2, %v2404_v10, 0.0 }
 0x4cd   : > { %v1357_v13 = vsub.f32 %v1348_v56, %v1356_v11  ;;  %1140 = vadd.xlane.f32.xlu0 %v1139_v12 }
 0x4cf   : > { %v1358_v14 = vmul.f32 1.442695, %v1357_v13 }
 0x4d1   : > { %2407 = vpow2.f32 %v1358_v14 }
 0x4d3   : > { %v2406_v15 = vpop.eup %2405 }
 0x4d4   : > { %v1250_v16 = vsel %vm975_vm2, %v2406_v15, 0.0 }
 0x4d5   : > { %1251 = vadd.xlane.f32.xlu1 %v1250_v16 }
 0x4db   : > { %v2408_v17 = vpop.eup %2407 }
 0x4dc   : > { %v1360_v18 = vsel %vm975_vm2, %v2408_v17, 0.0 }
 0x4dd   : > { %1361 = vadd.xlane.f32.xlu0 %v1360_v18  ;;  %v2396_v18 = vld [vmem:[#allocation23 + $0x8] sm:$0xff]  }
 0x4e6   : > { %1366 = vrot.lane.b32.xlu1 %v974_v43, %s3024_s27  ;;  %s1717_s27 = scalar_lea.sflag [#allocation4], %s3569_s18 }
 0x4e8   : > { %v1030_v19 = vpop.xlane.xlu1 %1029 }
 0x4e9   : > { %2409 = vrcp.f32 %v1030_v19 }
 0x4ec   : > { %v1147_v21 = vpop.permute.xlu1 %1146 }
 0x4ed   : > { %v1152_v24 = vsel %vm1037_vm3, %v1147_v21, 0 }
 0x4f3   : > { %v2410_v20 = vpop.eup %2409  ;;  %1256 = vrot.lane.b32.xlu0 %v974_v43, %s3022_s0  ;;  %s3852_s0 = sld [smem:[#allocation53_spill]] }
 0x4f4   : > { %v1032_v22 = vmul.f32 %v2410_v20, %v2402_v1 }
 0x4f6   : > { %v1033_v23 = vpack.c.bf16 %v1032_v22, %v1032_v22  ;;  %v2016_v22 = vld [vmem:[#allocation17] ss:$0 sm:$0xff] }
 0x4f8   : > { %2103 = vmatmul.mubr.msk.bf16.vlgmr.msra.gmra.mrb[8].mxu0 %vm975_vm2, %v1033_v23 }
 0x4f9   : > { %2113 = vmatpush3.bf16.msra.mxu0 %v1152_v24  ;;  %2114 = vmatprep.mubr.msk.bf16.mxu0 %vm3021_vm0, %v3020_v0  ;;  %v2017_v24 = vld [vmem:[#allocation19] ss:$0 sm:$0xff]  ;;  %s3718_s3 = scalar_lea.hbm %s3852_s0, %s2031_s21 }
 0x4fa   : > { %2124 = vmatprep.subr.bf16.mxu0 %v3020_v0 }
 0x55a   : > { %v1141_v25 = vpop.xlane.xlu0 %1140 }
 0x55b   : > { %2411 = vrcp.f32 %v1141_v25 }
 0x562   : > { %v1252_v26 = vpop.xlane.xlu1 %1251 }
 0x563   : > { %2413 = vrcp.f32 %v1252_v26 }
 0x565   : > { %v2412_v27 = vpop.eup %2411 }
 0x566   : > { %v1143_v28 = vmul.f32 %v2412_v27, %v2404_v10  ;;  %v1367_v35 = vpop.permute.xlu1 %1366 }
 0x567   : > { %v1372_v37 = vsel %vm1037_vm3, %v1367_v35, 0 }
 0x568   : > { %v1144_v29 = vpack.c.bf16 %v1143_v28, %v1143_v28  ;;  %v2397_v28 = vld [vmem:[#allocation26] sm:$0xff]  }
 0x56a   : > { %v1362_v30 = vpop.xlane.xlu0 %1361  ;;  %2115 = vmatmul.mubr.msk.bf16.vlgmr.msra.gmra.mrb[12].mxu0 %vm975_vm2, %v1144_v29  ;;  %v2398_v29 = vld [vmem:[#allocation26 + $0x8] sm:$0xff]  }
 0x56b   : > { %2415 = vrcp.f32 %v1362_v30  ;;  %2126 = vmatprep.mubr.msk.bf16.mxu0 %vm3021_vm0, %v3020_v0  ;;  %v2399_v30 = vld [vmem:[#allocation26 + $0x10] sm:$0xff]  }
 0x56d   : > { %v2414_v31 = vpop.eup %2413 }
 0x56e   : > { %v1254_v32 = vmul.f32 %v2414_v31, %v2406_v15  ;;  %v1257_v33 = vpop.permute.xlu0 %1256  ;;  %v2400_v31 = vld [vmem:[#allocation26 + $0x18] sm:$0xff]  }
 0x56f   : > { %v1262_v34 = vsel %vm1037_vm3, %v1257_v33, 0 }
 0x570   : > { %2125 = vmatpush3.bf16.msra.mxu0 %v1262_v34  ;;  %v1255_v36 = vpack.c.bf16 %v1254_v32, %v1254_v32  ;;  %v2018_v32 = vld [vmem:[#allocation25] ss:$0 sm:$0xff] }
 0x571   : > { %2136 = vmatprep.subr.bf16.mxu0 %v3020_v0 }
 0x573   : > { %2127 = vmatmul.mubr.msk.bf16.vlgmr.msra.gmra.mrb[16].mxu0 %vm975_vm2, %v1255_v36 }
 0x574   : > { %2137 = vmatpush3.bf16.msra.mxu0 %v1372_v37  ;;  %2138 = vmatprep.mubr.msk.bf16.mxu0 %vm3021_vm0, %v3020_v0 }
 0x575   : > { %v2416_v38 = vpop.eup %2415  ;;  %2150 = vmatprep.subr.bf16.mxu0 %v3020_v0 }
 0x576   : > { %v1364_v39 = vmul.f32 %v2416_v38, %v2408_v17  ;;  %v2395_v17 = vld [vmem:[#allocation23] sm:$0xff]  }
 0x578   : > { %v1365_v40 = vpack.c.bf16 %v1364_v39, %v1364_v39 }
 0x57b   : > { %2139 = vmatmul.mubr.msk.bf16.vlgmr.msra.gmra.mrb[20].mxu0 %vm975_vm2, %v1365_v40 }
 0x57c   : > { %2154 = vmatprep.mubr.msk.bf16.mxu0 %vm3021_vm0, %v3020_v0  ;;  %2151 = vmatpush3.bf16.msra.mxu0 %v2395_v17 }
 0x57d   : > { %2152 = vmatprep.subr.bf16.mxu0 %v3020_v0 }
 0x580   : > { %2153 = vmatpush3.bf16.msra.mxu0 %v2396_v18 }
 0x5cb   : > { %v1075_v41 = vpop.f32.mrb[8].mxu0 }
 0x5cc   : > { %v2104_v42 = vpop.f32.mrb[9].mxu0 }
 0x5cd   : > { %v1078_v43 = vpop.f32.mrb[10].mxu0 }
 0x5ce   : > { %v2105_v44 = vpop.f32.mrb[11].mxu0 }
 0x5cf   : > { %v2022_v44 = vld [vmem:[#allocation28] ss:$0 sm:$0xff] }
 0x63d   : > { %v1188_v46 = vpop.f32.mrb[12].mxu0 }
 0x63e   : > { %1415 = vrot.lane.b32.xlu1 %v1188_v46, %s3025_s22  ;;  %v2116_v47 = vpop.f32.mrb[13].mxu0  ;;  %s2901_s22 = scalar_lea.vmem %s3720_s23, 128 }
 0x63f   : > { %v1191_v48 = vpop.f32.mrb[14].mxu0  ;;  %p2902_p11 = scmp.ne.s32.totalorder %s3720_s23, %s2901_s22 }
 0x640   : > { %v2117_v49 = vpop.f32.mrb[15].mxu0 }
 0x641   : > { %p2903_p5 = pnand %p2902_p11, %p3853_p8 }
 0x643   : > { %p2904_p7 = pneg %p2903_p5 }
 0x646   : > { %v1298_v51 = vpop.f32.mrb[16].mxu0 }
 0x647   : > { %1419 = vrot.lane.b32.xlu0 %v1298_v51, %s3026_s24  ;;  %v2128_v52 = vpop.f32.mrb[17].mxu0  ;;  %s2907_s24 = scalar_lea.vmem %s2906_s4, 256 }
 0x648   : > { %v1301_v53 = vpop.f32.mrb[18].mxu0  ;;  %p2909_p9 = scmp.lt.s32.totalorder %s2907_s24, %s2901_s22 }
 0x649   : > { %v2129_v54 = vpop.f32.mrb[19].mxu0 }
 0x64a   : > { %p2910_p12 = por %p2909_p9, %p2908_p6 }
 0x64c   : > { %p2911_p1 = pnand %p2910_p12, %p2904_p7 }
 0x64e   : > { %v1408_v55 = vpop.f32.mrb[20].mxu0 }
 0x64f   : > { %1423 = vrot.lane.b32.xlu1 %v1408_v55, %s3027_s17  ;;  %v2140_v56 = vpop.f32.mrb[21].mxu0 }
 0x650   : > { %v1411_v57 = vpop.f32.mrb[22].mxu0 }
 0x651   : > { %v2141_v58 = vpop.f32.mrb[23].mxu0 }
 0x6b0   : > { %v1416_v59 = vpop.permute.xlu1 %1415 }
 0x6b1   : > { %v1426_v61 = vsel %vm975_vm2, %v1075_v41, %v1416_v59 }
 0x6b9   : > { %v1420_v60 = vpop.permute.xlu0 %1419 }
 0x6ba   : > { %v1428_v62 = vsel %vm1427_vm4, %v1426_v61, %v1420_v60  ;;  %v2028_v60 = vld [vmem:[#allocation20] ss:$0 sm:$0xff] }
 0x6c1   : > { %v1424_v63 = vpop.permute.xlu1 %1423 }
 0x6c2   : > { %v1430_v1 = vsel %vm1429_vm5, %v1428_v62, %v1424_v63  ;;  %v2029_v62 = vld [vmem:[#allocation22] ss:$0 sm:$0xff] }
 0x6c3   : > { %v1431_v2 = vpack.c.bf16 %v1430_v1, %v1430_v1 }
 0x6c5   : > { %2147 = vmatmul.mubr.msk.bf16.vlgmr.msra.gmra.mrb[20].mxu1 %vm802_vm1, %v1431_v2 }
 0x6c6   : > { %2166 = vmatprep.mubr.msk.bf16.mxu1 %vm3021_vm0, %v3020_v0  ;;  %2159 = vmatpush3.bf16.msra.mxu1 %v2397_v28 }
 0x6c7   : > { %2160 = vmatprep.subr.bf16.mxu1 %v3020_v0 }
 0x6ca   : > { %2161 = vmatpush3.bf16.msra.mxu1 %v2398_v29 }
 0x6cb   : > { %2162 = vmatprep.subr.bf16.mxu1 %v3020_v0 }
 0x6ce   : > { %2163 = vmatpush3.bf16.msra.mxu1 %v2399_v30 }
 0x6cf   : > { %2164 = vmatprep.subr.bf16.mxu1 %v3020_v0 }
 0x6d2   : > { %2165 = vmatpush3.bf16.msra.mxu1 %v2400_v31 }
 0x798   : > { %v1492_v5 = vpop.f32.mrb[20].mxu1 }
 0x799   : > { %v1493_v6 = vadd.f32 %v2012_v3, %v1492_v5  ;;  %v2148_v7 = vpop.f32.mrb[21].mxu1 }
 0x79a   : > { %v1495_v8 = vpop.f32.mrb[22].mxu1 }
 0x79b   : > { %v2149_v9 = vpop.f32.mrb[23].mxu1  ;;  %v1498_v10 = vadd.f32 %v1493_v6, %v3621_v4 }
 0x79d   : > { %v1501_v11 = vsel %vm802_vm1, %v1498_v10, 0.0 }
 0x79e   : > { %1502 = vadd.xlane.f32.xlu0 %v1501_v11 }
 0x82b   : > { %v1503_v12 = vpop.xlane.xlu0 %1502 }
 0x82c   : > { %v1505_v13 = vmul.f32 0.03125, %v1503_v12 }
 0x82e   : > { %v1506_v14 = vsub.f32 %v1498_v10, %v1505_v13 }
 0x830   : > { %v1507_v15 = vmul.f32 %v1506_v14, %v1506_v14 }
 0x832   : > { %v1508_v16 = vsel %vm802_vm1, %v1507_v15, 0.0 }
 0x833   : > { %1509 = vadd.xlane.f32.xlu1 %v1508_v16 }
 0x8c0   : > { %v1510_v19 = vpop.xlane.xlu1 %1509 }
 0x8c1   : > { %v1511_v20 = vmul.f32 0.03125, %v1510_v19 }
 0x8c3   : > { %v1512_v21 = vadd.f32 1e-05, %v1511_v20 }
 0x8c5   : > { %2417 = vrsqrt.f32 %v1512_v21 }
 0x8cf   : > { %v2418_v4 = vpop.eup %2417 }
 0x8d0   : > { %v1514_v23 = vmul.f32 %v2418_v4, %v1506_v14 }
 0x8d2   : > { %v1521_v25 = vmul.f32 %v2016_v22, %v1514_v23 }
 0x8d4   : > { %v1528_v26 = vadd.f32 %v2017_v24, %v1521_v25 }
 0x8d6   : > { %v1529_v27 = vpack.c.bf16 %v1528_v26, %v1528_v26 }
 0x8d8   : > { %2155 = vmatmul.mubr.msk.bf16.vlgmr.msra.gmra.mrb[24].mxu0 %vm802_vm1, %v1529_v27 }
 0x9ab   : > { %v1590_v33 = vpop.f32.mrb[24].mxu0 }
 0x9ac   : > { %v1591_v34 = vadd.f32 %v2018_v32, %v1590_v33  ;;  %v2156_v35 = vpop.f32.mrb[25].mxu0 }
 0x9ad   : > { %v1593_v36 = vpop.f32.mrb[26].mxu0 }
 0x9ae   : > { %v1597_v37 = vmul.f32 0.70710677, %v1591_v34  ;;  %v2157_v38 = vpop.f32.mrb[27].mxu0  ;;  %v1596_v40 = vmul.f32 0.5, %v1591_v34 }
 0x9b0   : > { %2419 = verf.f32 %v1597_v37 }
 0x9ba   : > { %v2420_v39 = vpop.eup %2419 }
 0x9bb   : > { %v1599_v41 = vadd.f32 1.0, %v2420_v39 }
 0x9bd   : > { %v1600_v42 = vmul.f32 %v1599_v41, %v1596_v40 }
 0x9bf   : > { %v1601_v43 = vpack.c.bf16 %v1600_v42, %v1600_v42 }
 0x9c1   : > { %2167 = vmatmul.mubr.msk.bf16.vlgmr.msra.gmra.mrb[24].mxu1 %vm1641_vm6, %v1601_v43 }
 0xa94   : > { %v1679_v45 = vpop.f32.mrb[24].mxu1 }
 0xa95   : > { %v1680_v0 = vadd.f32 %v2022_v44, %v1679_v45  ;;  %v2168_v46 = vpop.f32.mrb[25].mxu1 }
 0xa96   : > { %v1682_v47 = vpop.f32.mrb[26].mxu1 }
 0xa97   : > { %v2169_v48 = vpop.f32.mrb[27].mxu1  ;;  %v1685_v49 = vadd.f32 %v1680_v0, %v1528_v26 }
 0xa99   : > { %v1688_v50 = vsel %vm802_vm1, %v1685_v49, 0.0 }
 0xa9a   : > { %1689 = vadd.xlane.f32.xlu0 %v1688_v50 }
 0xb27   : > { %v1690_v51 = vpop.xlane.xlu0 %1689 }
 0xb28   : > { %v1691_v52 = vmul.f32 0.03125, %v1690_v51 }
 0xb2a   : > { %v1692_v53 = vsub.f32 %v1685_v49, %v1691_v52 }
 0xb2c   : > { %v1693_v54 = vmul.f32 %v1692_v53, %v1692_v53 }
 0xb2e   : > { %v1694_v55 = vsel %vm802_vm1, %v1693_v54, 0.0 }
 0xb2f   : > { %1695 = vadd.xlane.f32.xlu0 %v1694_v55 }
 0xbbc   : > { %v1696_v56 = vpop.xlane.xlu0 %1695 }
 0xbbd   : > { %v1697_v57 = vmul.f32 0.03125, %v1696_v56 }
 0xbbf   : > { %v1698_v58 = vadd.f32 1e-05, %v1697_v57 }
 0xbc1   : > { %2421 = vrsqrt.f32 %v1698_v58 }
 0xbcb   : > { %v2422_v59 = vpop.eup %2421 }
 0xbcc   : > { %v1700_v61 = vmul.f32 %v2422_v59, %v1692_v53 }
 0xbce   : > { %v1707_v63 = vmul.f32 %v2028_v60, %v1700_v61 }
 0xbd0   : > { %v1714_v1 = vadd.f32 %v2029_v62, %v1707_v63 }
 0xbd2   : > { %1715 = vst.msk [vmem:[%s775_s5] sm:$0xff] %vm802_vm1, %v1714_v1 }
 0xbd3   : > { %2914 = shalt.err (!%p2911_p1)
}
 0xbd4   : > { %s2915_s18 = scalar_lea.hbm %s3718_s3, 128  ;;  %s2919_s5 = scalar_lea.hbm %s3852_s0, 256 }
 0xbd5   : > { %p2916_p13 = scmp.ne.s32.totalorder %s3718_s3, %s2915_s18  ;;  %p2920_p3 = scmp.lt.u32.totalorder %s3718_s3, %s3852_s0 }
 0xbd6   : > { %p2921_p4 = scmp.lt.u32.totalorder %s2919_s5, %s2915_s18  ;;  %p2923_p11 = scmp.lt.u32.totalorder %s2915_s18, %s3718_s3 }
 0xbd7   : > { %p2917_p0 = pnand %p2916_p13, %p3853_p8 }
 0xbd8   : > { %p2922_p10 = por %p2921_p4, %p2920_p3 }
 0xbd9   : > { %p2918_p2 = pneg %p2917_p0 }
 0xbda   : > { %p2924_p5 = por %p2923_p11, %p2922_p10 }
 0xbdc   : > { %p2925_p7 = pnand %p2924_p5, %p2918_p2 }
 0xbde   : > { %2928 = shalt.err (!%p2925_p7)
}
 0xbdf   : > { %2236 = dma.vmem_to_hbm [thread:$0]  (%p3853_p8), %s3720_s23, 128, %s3718_s3, %s1717_s27  }
 0xbe0 PF: > { %s3854_s22 = sld [smem:[#allocation40_spill]]  ;;  %s3855_s29 = sld [smem:[#allocation43_spill]] }
 0xbe1   : > { %p3856_p6 = scmp.ne.s32.totalorder %s3828_s25, 0 }
 0xbe6   : > { %s1742_s4 = sand.u32 1, %s3854_s22   ;;  %p3857_p9 = scmp.ge.s32.totalorder %s3855_s29, 2 }
 0xbe7   : > { %s1743_s24 = scalar_lea.sflag [#allocation4], %s1742_s4 }
 0xbe8   : > { %p2292_p12 = pnand %p3857_p9, %p3856_p6 }
 0xbea   : > { %2982 = dma.done.wait (!%p2292_p12), %s1743_s24, 128  }
 0xbeb   : > { %2984 = vsyncadd (!%p2292_p12), %s1743_s24, 4294967168  ;;  %s3858_s24 = sld [smem:[#allocation41_spill]]  ;;  %s3859_s25 = sld [smem:[#allocation42_spill]] }
 0xbec   : > { %p38_p1 = scmp.ge.s32.totalorder %s3493_s1, 4   ;;  %s3860_s26 = smov %s3504_s19 }
 0xbed   : > { %s3861_s27 = smov %s3493_s1 }
 0xbee   :  { %40 = sbr.rel (!%p38_p1) target bundleno = 22 (0x16), region = 197 }
 0xbf5   :  { %1748 = vsyncpa [#allocation3], 1 }
 0xbf6   :  { %1750 = vsyncpa [#allocation3 + $0x1], 1 }
 0xbf7   :  { %1751 = vsyncpa [#allocation6], 1 }
 0xbf8   :  { %1752 = vsyncpa [#allocation9], 1 }
 0xbf9   :  { %1753 = vsyncpa [#allocation12], 1 }
 0xbfa   :  { %1754 = vsyncpa [#allocation15], 1 }
 0xbfb   :  { %1755 = vsyncpa [#allocation18], 1 }
 0xbfc   :  { %1756 = vsyncpa [#allocation21], 1 }
 0xbfd   :  { %1757 = vsyncpa [#allocation24], 1 }
 0xbfe   :  { %1758 = vsyncpa [#allocation27], 1 }
 0xbff   :  { %1759 = vsyncpa [#allocation4], 1 }
 0xc00   :  { %1761 = vsyncpa [#allocation4 + $0x1], 1 }

</bundles_post_ra>
